<compile_context>
chip_gen: v6e
topology: v6e:2x2x1
jax: 0.10.0
libtpu: 0.0.40
codegen_flags: <defaults>
</compile_context>

<pallas_src>
import math

import jax
import jax.numpy as jnp
from jax import lax
from jax.experimental import pallas as pl
from jax.experimental.pallas import tpu as pltpu


def _round_up(n, m):
    return ((n + m - 1) // m) * m


def rnn_encoder_kernel(
    xcat_ref,    # (T*Bp, 2E)  row t*Bp+b = [x[t,b] | x[T-1-t,b]]
    mask_ref,    # (T*Bp, 2H)  f32 validity: fwd half = (t < len), bwd half = (T-1-t < len)
    h0_ref,      # (Bp, 2H)    [h0_fwd | h0_bwd]
    wi_ref,      # (2E, 6H)    per-gate block-diag input weights [r | z | n]
    bi_ref,      # (1, 6H)
    whr_ref, whz_ref, whn_ref,   # (2H, 2H) block-diag hidden weights per gate
    bhr_ref, bhz_ref, bhn_ref,   # (1, 2H)
    fcwf_ref, fcwb_ref,          # (H, E)  attention fc weight split by direction
    fcb_ref,                     # (1, E)
    ctx_ref,                     # (Bp, E) attention context per batch row
    out_ref,                     # (Bp, E)
    gir_s, giz_s, gin_s,         # scratch (T*Bp, 2H): hoisted input projections
    outf_s, outb_s,              # scratch (T*Bp, 2H): fwd/bwd time-aligned GRU outputs
):
    f32 = jnp.float32
    Bp, E = ctx_ref.shape
    H = E // 2
    TB = mask_ref.shape[0]
    T = TB // Bp

    # ---- (1) hoisted input projection: one well-shaped matmul ---------------
    gi_all = (jnp.dot(xcat_ref[...], wi_ref[...], preferred_element_type=f32)
              + bi_ref[...])                                   # (T*Bp, 6H)
    gir_s[...] = gi_all[:, 0:2 * H]
    giz_s[...] = gi_all[:, 2 * H:4 * H]
    gin_s[...] = gi_all[:, 4 * H:6 * H]

    # ---- (2) fused fwd/bwd GRU recurrence on the concatenated state ---------
    whr = whr_ref[...]; whz = whz_ref[...]; whn = whn_ref[...]
    bhr = bhr_ref[...]; bhz = bhz_ref[...]; bhn = bhn_ref[...]

    def step(t, h):
        row = t * Bp                       # Bp is a multiple of 8 -> aligned
        m = mask_ref[pl.ds(row, Bp), :]                        # (Bp, 2H)
        gh_r = jnp.dot(h, whr, preferred_element_type=f32) + bhr
        gh_z = jnp.dot(h, whz, preferred_element_type=f32) + bhz
        gh_n = jnp.dot(h, whn, preferred_element_type=f32) + bhn
        r = jax.nn.sigmoid(gir_s[pl.ds(row, Bp), :] + gh_r)
        z = jax.nn.sigmoid(giz_s[pl.ds(row, Bp), :] + gh_z)
        n = jnp.tanh(gin_s[pl.ds(row, Bp), :] + r * gh_n)
        cand = (1.0 - z) * n + z * h
        cm = cand * m                      # zero padded steps (pad_packed_sequence)
        outf_s[pl.ds(row, Bp), :] = cm                 # fwd half valid at time t
        outb_s[pl.ds((T - 1 - t) * Bp, Bp), :] = cm    # bwd half valid at time T-1-t
        return cm + (1.0 - m) * h          # freeze hidden past the sequence length

    lax.fori_loop(0, T, step, h0_ref[...], unroll=True)

    # ---- (3) one-shot attention (SeqAttn) over all timesteps ----------------
    of = outf_s[...][:, 0:H]               # (T*Bp, H) forward outputs at time t
    ob = outb_s[...][:, H:2 * H]           # (T*Bp, H) backward outputs at time t
    pre = jnp.tanh(jnp.dot(of, fcwf_ref[...], preferred_element_type=f32)
                   + jnp.dot(ob, fcwb_ref[...], preferred_element_type=f32)
                   + fcb_ref[...])                             # (T*Bp, E)
    maskf = mask_ref[...][:, 0:1]                              # (T*Bp, 1)
    pre = pre * maskf                                          # masked activations

    ctx = ctx_ref[...]                                         # (Bp, E)
    # Load each per-timestep slice exactly once; reuse for scores and the
    # weighted sum (small enough at these shapes to stay in vregs).
    pre_t = [pre[t * Bp:(t + 1) * Bp, :] for t in range(T)]    # T x (Bp, E)
    # scores[t] = <pre[t, b, :], ctx[b, :]>  (supports per-row dcontext)
    scores = [jnp.sum(pt * ctx, axis=-1, keepdims=True) for pt in pre_t]
    mmax = scores[0]
    for t in range(1, T):
        mmax = jnp.maximum(mmax, scores[t])
    exps = [jnp.exp(s - mmax) for s in scores]
    denom = exps[0]
    for t in range(1, T):
        denom = denom + exps[t]
    inv = pl.reciprocal(denom, approx=True)                    # (Bp, 1)

    acc = jnp.zeros((Bp, E), f32)
    for t in range(T):
        acc = acc + pre_t[t] * (exps[t] * inv)
    out_ref[...] = acc


def rnn_encoder(x, lens, p, h0, dcontext=None):
    """x: (B, T, E) batch-first (PyTorch convention). Returns (B, E)."""
    B, T, E = x.shape
    H = E // 2
    f32 = jnp.float32
    Bp = _round_up(B, 8)                   # pad batch to full sublane groups
    pad = Bp - B

    x_p = jnp.pad(x.astype(f32), ((0, pad), (0, 0), (0, 0)))
    lens_p = jnp.pad(lens.astype(jnp.int32), ((0, pad),))
    h0_p = jnp.pad(h0.astype(f32), ((0, 0), (0, pad), (0, 0)))

    x_tm = jnp.transpose(x_p, (1, 0, 2))                       # (T, Bp, E)
    x_fwd = x_tm.reshape(T * Bp, E)
    x_bwd = x_tm[::-1].reshape(T * Bp, E)                      # time-reversed for bwd dir
    xcat = jnp.concatenate([x_fwd, x_bwd], axis=-1)            # (T*Bp, 2E)

    t_idx = jnp.arange(T, dtype=jnp.int32)
    vf = (t_idx[:, None] < lens_p[None, :]).astype(f32)              # (T, Bp)
    vb = ((T - 1 - t_idx)[:, None] < lens_p[None, :]).astype(f32)    # (T, Bp)
    mask_cat = jnp.concatenate(
        [jnp.broadcast_to(vf[:, :, None], (T, Bp, H)),
         jnp.broadcast_to(vb[:, :, None], (T, Bp, H))],
        axis=-1).reshape(T * Bp, 2 * H)

    h0_cat = jnp.concatenate([h0_p[0], h0_p[1]], axis=-1)      # (Bp, 2H)

    def gate(w, g):
        return w[:, g * H:(g + 1) * H]

    def blockdiag(a, b):
        za = jnp.zeros((a.shape[0], b.shape[1]), f32)
        zb = jnp.zeros((b.shape[0], a.shape[1]), f32)
        return jnp.concatenate(
            [jnp.concatenate([a, za], axis=1),
             jnp.concatenate([zb, b], axis=1)], axis=0)

    # Per-gate block-diagonal weights (fwd block acts on x, bwd block on x_rev).
    wi_all = jnp.concatenate(
        [blockdiag(gate(p["wih_f"], g), gate(p["wih_b"], g)) for g in range(3)],
        axis=1)                                                # (2E, 6H)
    bi_all = jnp.concatenate(
        [jnp.concatenate([gate(p["bih_f"], g), gate(p["bih_b"], g)], axis=1)
         for g in range(3)], axis=1)                           # (1, 6H)
    whr, whz, whn = [blockdiag(gate(p["whh_f"], g), gate(p["whh_b"], g))
                     for g in range(3)]                        # (2H, 2H) each
    bhr, bhz, bhn = [jnp.concatenate([gate(p["bhh_f"], g), gate(p["bhh_b"], g)],
                                     axis=1) for g in range(3)]  # (1, 2H) each

    fcw_f = p["fcw"][0:H, :]                                   # (H, E)
    fcw_b = p["fcw"][H:2 * H, :]                               # (H, E)

    if dcontext is None:
        ctx_b = jnp.broadcast_to(p["ctx"].reshape(1, E), (Bp, E)).astype(f32)
    else:
        ctx_b = jnp.pad(dcontext.astype(f32), ((0, pad), (0, 0)))

    vmem = pl.BlockSpec(memory_space=pltpu.MemorySpace.VMEM)
    out = pl.pallas_call(
        rnn_encoder_kernel,
        out_shape=jax.ShapeDtypeStruct((Bp, E), f32),
        in_specs=[vmem] * 15,
        out_specs=vmem,
        scratch_shapes=[
            pltpu.VMEM((T * Bp, 2 * H), f32),   # gi_r
            pltpu.VMEM((T * Bp, 2 * H), f32),   # gi_z
            pltpu.VMEM((T * Bp, 2 * H), f32),   # gi_n
            pltpu.VMEM((T * Bp, 2 * H), f32),   # out (fwd-time aligned)
            pltpu.VMEM((T * Bp, 2 * H), f32),   # out (bwd-time aligned)
        ],
        # TODO(synk): at production sizes add a batch-tiled grid with
        # dimension_semantics=("parallel",) so batch shards across TensorCores
        # and scratch stays bounded on v7x's 64 MiB VMEM.
    )(xcat, mask_cat, h0_cat, wi_all, bi_all, whr, whz, whn,
      bhr, bhz, bhn, fcw_f, fcw_b, p["fcb"], ctx_b)
    return out[:B]


def init_encoder_params(key, E):
    H = E // 2
    ks = jax.random.split(key, 11)
    s_gru = 1.0 / math.sqrt(H)
    s_fc = 1.0 / math.sqrt(E)
    u = lambda k, shape, s: jax.random.uniform(k, shape, jnp.float32, -s, s)
    # GRU weights stored transposed (so y = x @ W), gate order r, z, n.
    return {
        "wih_f": u(ks[0], (E, 3 * H), s_gru),
        "whh_f": u(ks[1], (H, 3 * H), s_gru),
        "bih_f": u(ks[2], (1, 3 * H), s_gru),
        "bhh_f": u(ks[3], (1, 3 * H), s_gru),
        "wih_b": u(ks[4], (E, 3 * H), s_gru),
        "whh_b": u(ks[5], (H, 3 * H), s_gru),
        "bih_b": u(ks[6], (1, 3 * H), s_gru),
        "bhh_b": u(ks[7], (1, 3 * H), s_gru),
        "fcw":   u(ks[8], (E, E), s_fc),      # fc weight transposed
        "fcb":   u(ks[9], (1, E), s_fc),
        "ctx":   jax.random.uniform(ks[10], (E, 1), jnp.float32),   # torch.rand
    }


def han_forward(sequence, sent_lens, doc_lens_list, params,
                sent_context=None, doc_context=None):
    E = sequence.shape[-1]
    # sentence-level encoder
    encoded_sents = rnn_encoder(sequence, sent_lens, params["sent"],
                                params["h0_sent"], sent_context)
    # pad_sequence(torch.split(encoded_sents, doc_lens)) -- plain-JAX glue
    max_doc_len = max(doc_lens_list)
    docs, start = [], 0
    for l in doc_lens_list:
        chunk = encoded_sents[start:start + l]
        pad = jnp.zeros((max_doc_len - l, E), jnp.float32)
        docs.append(jnp.concatenate([chunk, pad], axis=0))
        start += l
    docs = jnp.stack(docs, axis=0)                     # (num_docs, max_doc_len, E)
    doc_lens = jnp.array(doc_lens_list, jnp.int32)
    # document-level encoder
    encoded_docs = rnn_encoder(docs, doc_lens, params["doc"],
                               params["h0_doc"], doc_context)
    return encoded_sents, encoded_docs


if __name__ == "__main__":
    E = 32                     # embed_dim
    H = E // 2
    num_sents = 6              # total sentences across all documents
    max_sent_len = 8
    doc_lens_list = [4, 2]     # sentences per document
    num_docs = len(doc_lens_list)

    key = jax.random.PRNGKey(0)
    k_seq, k_sp, k_dp, k_h1, k_h2 = jax.random.split(key, 5)

    sequence = jax.random.normal(k_seq, (num_sents, max_sent_len, E), jnp.float32)
    # max(sent_lens) == max_sent_len so the padded width matches what
    # pad_packed_sequence would return in the reference implementation.
    sent_lens = jnp.array([8, 5, 3, 7, 2, 6], jnp.int32)

    params = {
        "sent": init_encoder_params(k_sp, E),
        "doc": init_encoder_params(k_dp, E),
        # deterministic stand-ins for the torch.randn initial hidden states
        "h0_sent": jax.random.normal(k_h1, (2, num_sents, H), jnp.float32),
        "h0_doc": jax.random.normal(k_h2, (2, num_docs, H), jnp.float32),
    }

    encoded_sents, encoded_docs = han_forward(sequence, sent_lens,
                                              doc_lens_list, params)
    jax.block_until_ready((encoded_sents, encoded_docs))

    assert encoded_sents.shape == (num_sents, E)
    assert encoded_docs.shape == (num_docs, E)
    assert bool(jnp.all(jnp.isfinite(encoded_sents)))
    assert bool(jnp.all(jnp.isfinite(encoded_docs)))
    print("KERNEL_OK")
</pallas_src>

<mosaic_0001>
module attributes {stable_mosaic.version = 11 : i64} {
  func.func @rnn_encoder_kernel(%arg0: memref<64x64xf32, #tpu.memory_space<vmem>>, %arg1: memref<64x32xf32, #tpu.memory_space<vmem>>, %arg2: memref<8x32xf32, #tpu.memory_space<vmem>>, %arg3: memref<64x96xf32, #tpu.memory_space<vmem>>, %arg4: memref<1x96xf32, #tpu.memory_space<vmem>>, %arg5: memref<32x32xf32, #tpu.memory_space<vmem>>, %arg6: memref<32x32xf32, #tpu.memory_space<vmem>>, %arg7: memref<32x32xf32, #tpu.memory_space<vmem>>, %arg8: memref<1x32xf32, #tpu.memory_space<vmem>>, %arg9: memref<1x32xf32, #tpu.memory_space<vmem>>, %arg10: memref<1x32xf32, #tpu.memory_space<vmem>>, %arg11: memref<16x32xf32, #tpu.memory_space<vmem>>, %arg12: memref<16x32xf32, #tpu.memory_space<vmem>>, %arg13: memref<1x32xf32, #tpu.memory_space<vmem>>, %arg14: memref<8x32xf32, #tpu.memory_space<vmem>>, %arg15: memref<8x32xf32, #tpu.memory_space<vmem>>, %arg16: memref<64x32xf32, #tpu.memory_space<vmem>>, %arg17: memref<64x32xf32, #tpu.memory_space<vmem>>, %arg18: memref<64x32xf32, #tpu.memory_space<vmem>>, %arg19: memref<64x32xf32, #tpu.memory_space<vmem>>, %arg20: memref<64x32xf32, #tpu.memory_space<vmem>>) attributes {dimension_semantics = [], scalar_prefetch = 0 : i64, scratch_operands = 5 : i64, tpu.core_type = #tpu.core_type<tc>} {
    %c0 = arith.constant 0 : index
    %c0_0 = arith.constant 0 : index
    %0 = vector.load %arg0[%c0, %c0_0] : memref<64x64xf32, #tpu.memory_space<vmem>>, vector<64x64xf32>
    %c0_1 = arith.constant 0 : index
    %c0_2 = arith.constant 0 : index
    %1 = vector.load %arg3[%c0_1, %c0_2] : memref<64x96xf32, #tpu.memory_space<vmem>>, vector<64x96xf32>
    %cst = arith.constant dense<0.000000e+00> : vector<64x96xf32>
    %2 = tpu.matmul %0, %1, %cst {dimension_numbers = #tpu.dot_dimension_numbers<[1], [0], [0], [1], [0, 0, 1, 1], [], []>} : vector<64x64xf32>, vector<64x96xf32>, vector<64x96xf32> -> vector<64x96xf32>
    %c0_3 = arith.constant 0 : index
    %c0_4 = arith.constant 0 : index
    %3 = vector.load %arg4[%c0_3, %c0_4] : memref<1x96xf32, #tpu.memory_space<vmem>>, vector<1x96xf32>
    %4 = vector.broadcast %3 : vector<1x96xf32> to vector<64x96xf32>
    %5 = arith.addf %2, %4 : vector<64x96xf32>
    %6 = vector.extract_strided_slice %5 {offsets = [0, 0], sizes = [64, 32], strides = [1, 1]} : vector<64x96xf32> to vector<64x32xf32>
    %c0_5 = arith.constant 0 : index
    %c0_6 = arith.constant 0 : index
    %7 = vector.load %arg16[%c0_5, %c0_6] : memref<64x32xf32, #tpu.memory_space<vmem>>, vector<64x32xf32>
    tpu.vector_store %arg16[%c0_5, %c0_6], %6 {strides = array<i32>} : memref<64x32xf32, #tpu.memory_space<vmem>>, vector<64x32xf32>,
    %8 = vector.extract_strided_slice %5 {offsets = [0, 32], sizes = [64, 32], strides = [1, 1]} : vector<64x96xf32> to vector<64x32xf32>
    %c0_7 = arith.constant 0 : index
    %c0_8 = arith.constant 0 : index
    %9 = vector.load %arg17[%c0_7, %c0_8] : memref<64x32xf32, #tpu.memory_space<vmem>>, vector<64x32xf32>
    tpu.vector_store %arg17[%c0_7, %c0_8], %8 {strides = array<i32>} : memref<64x32xf32, #tpu.memory_space<vmem>>, vector<64x32xf32>,
    %10 = vector.extract_strided_slice %5 {offsets = [0, 64], sizes = [64, 32], strides = [1, 1]} : vector<64x96xf32> to vector<64x32xf32>
    %c0_9 = arith.constant 0 : index
    %c0_10 = arith.constant 0 : index
    %11 = vector.load %arg18[%c0_9, %c0_10] : memref<64x32xf32, #tpu.memory_space<vmem>>, vector<64x32xf32>
    tpu.vector_store %arg18[%c0_9, %c0_10], %10 {strides = array<i32>} : memref<64x32xf32, #tpu.memory_space<vmem>>, vector<64x32xf32>,
    %c0_11 = arith.constant 0 : index
    %c0_12 = arith.constant 0 : index
    %12 = vector.load %arg5[%c0_11, %c0_12] : memref<32x32xf32, #tpu.memory_space<vmem>>, vector<32x32xf32>
    %c0_13 = arith.constant 0 : index
    %c0_14 = arith.constant 0 : index
    %13 = vector.load %arg6[%c0_13, %c0_14] : memref<32x32xf32, #tpu.memory_space<vmem>>, vector<32x32xf32>
    %c0_15 = arith.constant 0 : index
    %c0_16 = arith.constant 0 : index
    %14 = vector.load %arg7[%c0_15, %c0_16] : memref<32x32xf32, #tpu.memory_space<vmem>>, vector<32x32xf32>
    %c0_17 = arith.constant 0 : index
    %c0_18 = arith.constant 0 : index
    %15 = vector.load %arg8[%c0_17, %c0_18] : memref<1x32xf32, #tpu.memory_space<vmem>>, vector<1x32xf32>
    %c0_19 = arith.constant 0 : index
    %c0_20 = arith.constant 0 : index
    %16 = vector.load %arg9[%c0_19, %c0_20] : memref<1x32xf32, #tpu.memory_space<vmem>>, vector<1x32xf32>
    %c0_21 = arith.constant 0 : index
    %c0_22 = arith.constant 0 : index
    %17 = vector.load %arg10[%c0_21, %c0_22] : memref<1x32xf32, #tpu.memory_space<vmem>>, vector<1x32xf32>
    %c0_23 = arith.constant 0 : index
    %c0_24 = arith.constant 0 : index
    %18 = vector.load %arg2[%c0_23, %c0_24] : memref<8x32xf32, #tpu.memory_space<vmem>>, vector<8x32xf32>
    %c0_i32 = arith.constant 0 : i32
    %c8_i32 = arith.constant 8 : i32
    %19 = arith.muli %c0_i32, %c8_i32 : i32
    %20 = arith.index_cast %19 : i32 to index
    %c0_25 = arith.constant 0 : index
    %21 = vector.load %arg1[%20, %c0_25] : memref<64x32xf32, #tpu.memory_space<vmem>>, vector<8x32xf32>
    %cst_26 = arith.constant dense<0.000000e+00> : vector<8x32xf32>
    %22 = tpu.matmul %18, %12, %cst_26 {dimension_numbers = #tpu.dot_dimension_numbers<[1], [0], [0], [1], [0, 0, 1, 1], [], []>} : vector<8x32xf32>, vector<32x32xf32>, vector<8x32xf32> -> vector<8x32xf32>
    %23 = vector.broadcast %15 : vector<1x32xf32> to vector<8x32xf32>
    %24 = arith.addf %22, %23 : vector<8x32xf32>
    %cst_27 = arith.constant dense<0.000000e+00> : vector<8x32xf32>
    %25 = tpu.matmul %18, %13, %cst_27 {dimension_numbers = #tpu.dot_dimension_numbers<[1], [0], [0], [1], [0, 0, 1, 1], [], []>} : vector<8x32xf32>, vector<32x32xf32>, vector<8x32xf32> -> vector<8x32xf32>
    %26 = vector.broadcast %16 : vector<1x32xf32> to vector<8x32xf32>
    %27 = arith.addf %25, %26 : vector<8x32xf32>
    %cst_28 = arith.constant dense<0.000000e+00> : vector<8x32xf32>
    %28 = tpu.matmul %18, %14, %cst_28 {dimension_numbers = #tpu.dot_dimension_numbers<[1], [0], [0], [1], [0, 0, 1, 1], [], []>} : vector<8x32xf32>, vector<32x32xf32>, vector<8x32xf32> -> vector<8x32xf32>
    %29 = vector.broadcast %17 : vector<1x32xf32> to vector<8x32xf32>
    %30 = arith.addf %28, %29 : vector<8x32xf32>
    %31 = arith.index_cast %19 : i32 to index
    %c0_29 = arith.constant 0 : index
    %32 = vector.load %arg16[%31, %c0_29] : memref<64x32xf32, #tpu.memory_space<vmem>>, vector<8x32xf32>
    %33 = arith.addf %32, %24 : vector<8x32xf32>
    %34 = arith.negf %33 : vector<8x32xf32>
    %35 = math.exp %34 : vector<8x32xf32>
    %cst_30 = arith.constant 1.000000e+00 : f32
    %36 = vector.broadcast %cst_30 : f32 to vector<8x32xf32>
    %37 = arith.addf %36, %35 : vector<8x32xf32>
    %38 = arith.divf %36, %37 : vector<8x32xf32>
    %39 = arith.index_cast %19 : i32 to index
    %c0_31 = arith.constant 0 : index
    %40 = vector.load %arg17[%39, %c0_31] : memref<64x32xf32, #tpu.memory_space<vmem>>, vector<8x32xf32>
    %41 = arith.addf %40, %27 : vector<8x32xf32>
    %42 = arith.negf %41 : vector<8x32xf32>
    %43 = math.exp %42 : vector<8x32xf32>
    %cst_32 = arith.constant 1.000000e+00 : f32
    %44 = vector.broadcast %cst_32 : f32 to vector<8x32xf32>
    %45 = arith.addf %44, %43 : vector<8x32xf32>
    %46 = arith.divf %44, %45 : vector<8x32xf32>
    %47 = arith.index_cast %19 : i32 to index
    %c0_33 = arith.constant 0 : index
    %48 = vector.load %arg18[%47, %c0_33] : memref<64x32xf32, #tpu.memory_space<vmem>>, vector<8x32xf32>
    %49 = arith.mulf %38, %30 : vector<8x32xf32>
    %50 = arith.addf %48, %49 : vector<8x32xf32>
    %51 = math.tanh %50 : vector<8x32xf32>
    %cst_34 = arith.constant 1.000000e+00 : f32
    %52 = vector.broadcast %cst_34 : f32 to vector<8x32xf32>
    %53 = arith.subf %52, %46 : vector<8x32xf32>
    %54 = arith.mulf %53, %51 : vector<8x32xf32>
    %55 = arith.mulf %46, %18 : vector<8x32xf32>
    %56 = arith.addf %54, %55 : vector<8x32xf32>
    %57 = arith.mulf %56, %21 : vector<8x32xf32>
    %58 = arith.index_cast %19 : i32 to index
    %c0_35 = arith.constant 0 : index
    %59 = vector.load %arg19[%58, %c0_35] : memref<64x32xf32, #tpu.memory_space<vmem>>, vector<8x32xf32>
    tpu.vector_store %arg19[%58, %c0_35], %57 {strides = array<i32>} : memref<64x32xf32, #tpu.memory_space<vmem>>, vector<8x32xf32>,
    %c7_i32 = arith.constant 7 : i32
    %60 = arith.subi %c7_i32, %c0_i32 : i32
    %c8_i32_36 = arith.constant 8 : i32
    %61 = arith.muli %60, %c8_i32_36 : i32
    %62 = arith.index_cast %61 : i32 to index
    %c0_37 = arith.constant 0 : index
    %63 = vector.load %arg20[%62, %c0_37] : memref<64x32xf32, #tpu.memory_space<vmem>>, vector<8x32xf32>
    tpu.vector_store %arg20[%62, %c0_37], %57 {strides = array<i32>} : memref<64x32xf32, #tpu.memory_space<vmem>>, vector<8x32xf32>,
    %cst_38 = arith.constant 1.000000e+00 : f32
    %64 = vector.broadcast %cst_38 : f32 to vector<8x32xf32>
    %65 = arith.subf %64, %21 : vector<8x32xf32>
    %66 = arith.mulf %65, %18 : vector<8x32xf32>
    %67 = arith.addf %57, %66 : vector<8x32xf32>
    %c1_i32 = arith.constant 1 : i32
    %c8_i32_39 = arith.constant 8 : i32
    %68 = arith.muli %c1_i32, %c8_i32_39 : i32
    %69 = arith.index_cast %68 : i32 to index
    %c0_40 = arith.constant 0 : index
    %70 = vector.load %arg1[%69, %c0_40] : memref<64x32xf32, #tpu.memory_space<vmem>>, vector<8x32xf32>
    %cst_41 = arith.constant dense<0.000000e+00> : vector<8x32xf32>
    %71 = tpu.matmul %67, %12, %cst_41 {dimension_numbers = #tpu.dot_dimension_numbers<[1], [0], [0], [1], [0, 0, 1, 1], [], []>} : vector<8x32xf32>, vector<32x32xf32>, vector<8x32xf32> -> vector<8x32xf32>
    %72 = vector.broadcast %15 : vector<1x32xf32> to vector<8x32xf32>
    %73 = arith.addf %71, %72 : vector<8x32xf32>
    %cst_42 = arith.constant dense<0.000000e+00> : vector<8x32xf32>
    %74 = tpu.matmul %67, %13, %cst_42 {dimension_numbers = #tpu.dot_dimension_numbers<[1], [0], [0], [1], [0, 0, 1, 1], [], []>} : vector<8x32xf32>, vector<32x32xf32>, vector<8x32xf32> -> vector<8x32xf32>
    %75 = vector.broadcast %16 : vector<1x32xf32> to vector<8x32xf32>
    %76 = arith.addf %74, %75 : vector<8x32xf32>
    %cst_43 = arith.constant dense<0.000000e+00> : vector<8x32xf32>
    %77 = tpu.matmul %67, %14, %cst_43 {dimension_numbers = #tpu.dot_dimension_numbers<[1], [0], [0], [1], [0, 0, 1, 1], [], []>} : vector<8x32xf32>, vector<32x32xf32>, vector<8x32xf32> -> vector<8x32xf32>
    %78 = vector.broadcast %17 : vector<1x32xf32> to vector<8x32xf32>
    %79 = arith.addf %77, %78 : vector<8x32xf32>
    %80 = arith.index_cast %68 : i32 to index
    %c0_44 = arith.constant 0 : index
    %81 = vector.load %arg16[%80, %c0_44] : memref<64x32xf32, #tpu.memory_space<vmem>>, vector<8x32xf32>
    %82 = arith.addf %81, %73 : vector<8x32xf32>
    %83 = arith.negf %82 : vector<8x32xf32>
    %84 = math.exp %83 : vector<8x32xf32>
    %cst_45 = arith.constant 1.000000e+00 : f32
    %85 = vector.broadcast %cst_45 : f32 to vector<8x32xf32>
    %86 = arith.addf %85, %84 : vector<8x32xf32>
    %87 = arith.divf %85, %86 : vector<8x32xf32>
    %88 = arith.index_cast %68 : i32 to index
    %c0_46 = arith.constant 0 : index
    %89 = vector.load %arg17[%88, %c0_46] : memref<64x32xf32, #tpu.memory_space<vmem>>, vector<8x32xf32>
    %90 = arith.addf %89, %76 : vector<8x32xf32>
    %91 = arith.negf %90 : vector<8x32xf32>
    %92 = math.exp %91 : vector<8x32xf32>
    %cst_47 = arith.constant 1.000000e+00 : f32
    %93 = vector.broadcast %cst_47 : f32 to vector<8x32xf32>
    %94 = arith.addf %93, %92 : vector<8x32xf32>
    %95 = arith.divf %93, %94 : vector<8x32xf32>
    %96 = arith.index_cast %68 : i32 to index
    %c0_48 = arith.constant 0 : index
    %97 = vector.load %arg18[%96, %c0_48] : memref<64x32xf32, #tpu.memory_space<vmem>>, vector<8x32xf32>
    %98 = arith.mulf %87, %79 : vector<8x32xf32>
    %99 = arith.addf %97, %98 : vector<8x32xf32>
    %100 = math.tanh %99 : vector<8x32xf32>
    %cst_49 = arith.constant 1.000000e+00 : f32
    %101 = vector.broadcast %cst_49 : f32 to vector<8x32xf32>
    %102 = arith.subf %101, %95 : vector<8x32xf32>
    %103 = arith.mulf %102, %100 : vector<8x32xf32>
    %104 = arith.mulf %95, %67 : vector<8x32xf32>
    %105 = arith.addf %103, %104 : vector<8x32xf32>
    %106 = arith.mulf %105, %70 : vector<8x32xf32>
    %107 = arith.index_cast %68 : i32 to index
    %c0_50 = arith.constant 0 : index
    %108 = vector.load %arg19[%107, %c0_50] : memref<64x32xf32, #tpu.memory_space<vmem>>, vector<8x32xf32>
    tpu.vector_store %arg19[%107, %c0_50], %106 {strides = array<i32>} : memref<64x32xf32, #tpu.memory_space<vmem>>, vector<8x32xf32>,
    %c7_i32_51 = arith.constant 7 : i32
    %109 = arith.subi %c7_i32_51, %c1_i32 : i32
    %c8_i32_52 = arith.constant 8 : i32
    %110 = arith.muli %109, %c8_i32_52 : i32
    %111 = arith.index_cast %110 : i32 to index
    %c0_53 = arith.constant 0 : index
    %112 = vector.load %arg20[%111, %c0_53] : memref<64x32xf32, #tpu.memory_space<vmem>>, vector<8x32xf32>
    tpu.vector_store %arg20[%111, %c0_53], %106 {strides = array<i32>} : memref<64x32xf32, #tpu.memory_space<vmem>>, vector<8x32xf32>,
    %cst_54 = arith.constant 1.000000e+00 : f32
    %113 = vector.broadcast %cst_54 : f32 to vector<8x32xf32>
    %114 = arith.subf %113, %70 : vector<8x32xf32>
    %115 = arith.mulf %114, %67 : vector<8x32xf32>
    %116 = arith.addf %106, %115 : vector<8x32xf32>
    %c2_i32 = arith.constant 2 : i32
    %c8_i32_55 = arith.constant 8 : i32
    %117 = arith.muli %c2_i32, %c8_i32_55 : i32
    %118 = arith.index_cast %117 : i32 to index
    %c0_56 = arith.constant 0 : index
    %119 = vector.load %arg1[%118, %c0_56] : memref<64x32xf32, #tpu.memory_space<vmem>>, vector<8x32xf32>
    %cst_57 = arith.constant dense<0.000000e+00> : vector<8x32xf32>
    %120 = tpu.matmul %116, %12, %cst_57 {dimension_numbers = #tpu.dot_dimension_numbers<[1], [0], [0], [1], [0, 0, 1, 1], [], []>} : vector<8x32xf32>, vector<32x32xf32>, vector<8x32xf32> -> vector<8x32xf32>
    %121 = vector.broadcast %15 : vector<1x32xf32> to vector<8x32xf32>
    %122 = arith.addf %120, %121 : vector<8x32xf32>
    %cst_58 = arith.constant dense<0.000000e+00> : vector<8x32xf32>
    %123 = tpu.matmul %116, %13, %cst_58 {dimension_numbers = #tpu.dot_dimension_numbers<[1], [0], [0], [1], [0, 0, 1, 1], [], []>} : vector<8x32xf32>, vector<32x32xf32>, vector<8x32xf32> -> vector<8x32xf32>
    %124 = vector.broadcast %16 : vector<1x32xf32> to vector<8x32xf32>
    %125 = arith.addf %123, %124 : vector<8x32xf32>
    %cst_59 = arith.constant dense<0.000000e+00> : vector<8x32xf32>
    %126 = tpu.matmul %116, %14, %cst_59 {dimension_numbers = #tpu.dot_dimension_numbers<[1], [0], [0], [1], [0, 0, 1, 1], [], []>} : vector<8x32xf32>, vector<32x32xf32>, vector<8x32xf32> -> vector<8x32xf32>
    %127 = vector.broadcast %17 : vector<1x32xf32> to vector<8x32xf32>
    %128 = arith.addf %126, %127 : vector<8x32xf32>
    %129 = arith.index_cast %117 : i32 to index
    %c0_60 = arith.constant 0 : index
    %130 = vector.load %arg16[%129, %c0_60] : memref<64x32xf32, #tpu.memory_space<vmem>>, vector<8x32xf32>
    %131 = arith.addf %130, %122 : vector<8x32xf32>
    %132 = arith.negf %131 : vector<8x32xf32>
    %133 = math.exp %132 : vector<8x32xf32>
    %cst_61 = arith.constant 1.000000e+00 : f32
    %134 = vector.broadcast %cst_61 : f32 to vector<8x32xf32>
    %135 = arith.addf %134, %133 : vector<8x32xf32>
    %136 = arith.divf %134, %135 : vector<8x32xf32>
    %137 = arith.index_cast %117 : i32 to index
    %c0_62 = arith.constant 0 : index
    %138 = vector.load %arg17[%137, %c0_62] : memref<64x32xf32, #tpu.memory_space<vmem>>, vector<8x32xf32>
    %139 = arith.addf %138, %125 : vector<8x32xf32>
    %140 = arith.negf %139 : vector<8x32xf32>
    %141 = math.exp %140 : vector<8x32xf32>
    %cst_63 = arith.constant 1.000000e+00 : f32
    %142 = vector.broadcast %cst_63 : f32 to vector<8x32xf32>
    %143 = arith.addf %142, %141 : vector<8x32xf32>
    %144 = arith.divf %142, %143 : vector<8x32xf32>
    %145 = arith.index_cast %117 : i32 to index
    %c0_64 = arith.constant 0 : index
    %146 = vector.load %arg18[%145, %c0_64] : memref<64x32xf32, #tpu.memory_space<vmem>>, vector<8x32xf32>
    %147 = arith.mulf %136, %128 : vector<8x32xf32>
    %148 = arith.addf %146, %147 : vector<8x32xf32>
    %149 = math.tanh %148 : vector<8x32xf32>
    %cst_65 = arith.constant 1.000000e+00 : f32
    %150 = vector.broadcast %cst_65 : f32 to vector<8x32xf32>
    %151 = arith.subf %150, %144 : vector<8x32xf32>
    %152 = arith.mulf %151, %149 : vector<8x32xf32>
    %153 = arith.mulf %144, %116 : vector<8x32xf32>
    %154 = arith.addf %152, %153 : vector<8x32xf32>
    %155 = arith.mulf %154, %119 : vector<8x32xf32>
    %156 = arith.index_cast %117 : i32 to index
    %c0_66 = arith.constant 0 : index
    %157 = vector.load %arg19[%156, %c0_66] : memref<64x32xf32, #tpu.memory_space<vmem>>, vector<8x32xf32>
    tpu.vector_store %arg19[%156, %c0_66], %155 {strides = array<i32>} : memref<64x32xf32, #tpu.memory_space<vmem>>, vector<8x32xf32>,
    %c7_i32_67 = arith.constant 7 : i32
    %158 = arith.subi %c7_i32_67, %c2_i32 : i32
    %c8_i32_68 = arith.constant 8 : i32
    %159 = arith.muli %158, %c8_i32_68 : i32
    %160 = arith.index_cast %159 : i32 to index
    %c0_69 = arith.constant 0 : index
    %161 = vector.load %arg20[%160, %c0_69] : memref<64x32xf32, #tpu.memory_space<vmem>>, vector<8x32xf32>
    tpu.vector_store %arg20[%160, %c0_69], %155 {strides = array<i32>} : memref<64x32xf32, #tpu.memory_space<vmem>>, vector<8x32xf32>,
    %cst_70 = arith.constant 1.000000e+00 : f32
    %162 = vector.broadcast %cst_70 : f32 to vector<8x32xf32>
    %163 = arith.subf %162, %119 : vector<8x32xf32>
    %164 = arith.mulf %163, %116 : vector<8x32xf32>
    %165 = arith.addf %155, %164 : vector<8x32xf32>
    %c3_i32 = arith.constant 3 : i32
    %c8_i32_71 = arith.constant 8 : i32
    %166 = arith.muli %c3_i32, %c8_i32_71 : i32
    %167 = arith.index_cast %166 : i32 to index
    %c0_72 = arith.constant 0 : index
    %168 = vector.load %arg1[%167, %c0_72] : memref<64x32xf32, #tpu.memory_space<vmem>>, vector<8x32xf32>
    %cst_73 = arith.constant dense<0.000000e+00> : vector<8x32xf32>
    %169 = tpu.matmul %165, %12, %cst_73 {dimension_numbers = #tpu.dot_dimension_numbers<[1], [0], [0], [1], [0, 0, 1, 1], [], []>} : vector<8x32xf32>, vector<32x32xf32>, vector<8x32xf32> -> vector<8x32xf32>
    %170 = vector.broadcast %15 : vector<1x32xf32> to vector<8x32xf32>
    %171 = arith.addf %169, %170 : vector<8x32xf32>
    %cst_74 = arith.constant dense<0.000000e+00> : vector<8x32xf32>
    %172 = tpu.matmul %165, %13, %cst_74 {dimension_numbers = #tpu.dot_dimension_numbers<[1], [0], [0], [1], [0, 0, 1, 1], [], []>} : vector<8x32xf32>, vector<32x32xf32>, vector<8x32xf32> -> vector<8x32xf32>
    %173 = vector.broadcast %16 : vector<1x32xf32> to vector<8x32xf32>
    %174 = arith.addf %172, %173 : vector<8x32xf32>
    %cst_75 = arith.constant dense<0.000000e+00> : vector<8x32xf32>
    %175 = tpu.matmul %165, %14, %cst_75 {dimension_numbers = #tpu.dot_dimension_numbers<[1], [0], [0], [1], [0, 0, 1, 1], [], []>} : vector<8x32xf32>, vector<32x32xf32>, vector<8x32xf32> -> vector<8x32xf32>
    %176 = vector.broadcast %17 : vector<1x32xf32> to vector<8x32xf32>
    %177 = arith.addf %175, %176 : vector<8x32xf32>
    %178 = arith.index_cast %166 : i32 to index
    %c0_76 = arith.constant 0 : index
    %179 = vector.load %arg16[%178, %c0_76] : memref<64x32xf32, #tpu.memory_space<vmem>>, vector<8x32xf32>
    %180 = arith.addf %179, %171 : vector<8x32xf32>
    %181 = arith.negf %180 : vector<8x32xf32>
    %182 = math.exp %181 : vector<8x32xf32>
    %cst_77 = arith.constant 1.000000e+00 : f32
    %183 = vector.broadcast %cst_77 : f32 to vector<8x32xf32>
    %184 = arith.addf %183, %182 : vector<8x32xf32>
    %185 = arith.divf %183, %184 : vector<8x32xf32>
    %186 = arith.index_cast %166 : i32 to index
    %c0_78 = arith.constant 0 : index
    %187 = vector.load %arg17[%186, %c0_78] : memref<64x32xf32, #tpu.memory_space<vmem>>, vector<8x32xf32>
    %188 = arith.addf %187, %174 : vector<8x32xf32>
    %189 = arith.negf %188 : vector<8x32xf32>
    %190 = math.exp %189 : vector<8x32xf32>
    %cst_79 = arith.constant 1.000000e+00 : f32
    %191 = vector.broadcast %cst_79 : f32 to vector<8x32xf32>
    %192 = arith.addf %191, %190 : vector<8x32xf32>
    %193 = arith.divf %191, %192 : vector<8x32xf32>
    %194 = arith.index_cast %166 : i32 to index
    %c0_80 = arith.constant 0 : index
    %195 = vector.load %arg18[%194, %c0_80] : memref<64x32xf32, #tpu.memory_space<vmem>>, vector<8x32xf32>
    %196 = arith.mulf %185, %177 : vector<8x32xf32>
    %197 = arith.addf %195, %196 : vector<8x32xf32>
    %198 = math.tanh %197 : vector<8x32xf32>
    %cst_81 = arith.constant 1.000000e+00 : f32
    %199 = vector.broadcast %cst_81 : f32 to vector<8x32xf32>
    %200 = arith.subf %199, %193 : vector<8x32xf32>
    %201 = arith.mulf %200, %198 : vector<8x32xf32>
    %202 = arith.mulf %193, %165 : vector<8x32xf32>
    %203 = arith.addf %201, %202 : vector<8x32xf32>
    %204 = arith.mulf %203, %168 : vector<8x32xf32>
    %205 = arith.index_cast %166 : i32 to index
    %c0_82 = arith.constant 0 : index
    %206 = vector.load %arg19[%205, %c0_82] : memref<64x32xf32, #tpu.memory_space<vmem>>, vector<8x32xf32>
    tpu.vector_store %arg19[%205, %c0_82], %204 {strides = array<i32>} : memref<64x32xf32, #tpu.memory_space<vmem>>, vector<8x32xf32>,
    %c7_i32_83 = arith.constant 7 : i32
    %207 = arith.subi %c7_i32_83, %c3_i32 : i32
    %c8_i32_84 = arith.constant 8 : i32
    %208 = arith.muli %207, %c8_i32_84 : i32
    %209 = arith.index_cast %208 : i32 to index
    %c0_85 = arith.constant 0 : index
    %210 = vector.load %arg20[%209, %c0_85] : memref<64x32xf32, #tpu.memory_space<vmem>>, vector<8x32xf32>
    tpu.vector_store %arg20[%209, %c0_85], %204 {strides = array<i32>} : memref<64x32xf32, #tpu.memory_space<vmem>>, vector<8x32xf32>,
    %cst_86 = arith.constant 1.000000e+00 : f32
    %211 = vector.broadcast %cst_86 : f32 to vector<8x32xf32>
    %212 = arith.subf %211, %168 : vector<8x32xf32>
    %213 = arith.mulf %212, %165 : vector<8x32xf32>
    %214 = arith.addf %204, %213 : vector<8x32xf32>
    %c4_i32 = arith.constant 4 : i32
    %c8_i32_87 = arith.constant 8 : i32
    %215 = arith.muli %c4_i32, %c8_i32_87 : i32
    %216 = arith.index_cast %215 : i32 to index
    %c0_88 = arith.constant 0 : index
    %217 = vector.load %arg1[%216, %c0_88] : memref<64x32xf32, #tpu.memory_space<vmem>>, vector<8x32xf32>
    %cst_89 = arith.constant dense<0.000000e+00> : vector<8x32xf32>
    %218 = tpu.matmul %214, %12, %cst_89 {dimension_numbers = #tpu.dot_dimension_numbers<[1], [0], [0], [1], [0, 0, 1, 1], [], []>} : vector<8x32xf32>, vector<32x32xf32>, vector<8x32xf32> -> vector<8x32xf32>
    %219 = vector.broadcast %15 : vector<1x32xf32> to vector<8x32xf32>
    %220 = arith.addf %218, %219 : vector<8x32xf32>
    %cst_90 = arith.constant dense<0.000000e+00> : vector<8x32xf32>
    %221 = tpu.matmul %214, %13, %cst_90 {dimension_numbers = #tpu.dot_dimension_numbers<[1], [0], [0], [1], [0, 0, 1, 1], [], []>} : vector<8x32xf32>, vector<32x32xf32>, vector<8x32xf32> -> vector<8x32xf32>
    %222 = vector.broadcast %16 : vector<1x32xf32> to vector<8x32xf32>
    %223 = arith.addf %221, %222 : vector<8x32xf32>
    %cst_91 = arith.constant dense<0.000000e+00> : vector<8x32xf32>
    %224 = tpu.matmul %214, %14, %cst_91 {dimension_numbers = #tpu.dot_dimension_numbers<[1], [0], [0], [1], [0, 0, 1, 1], [], []>} : vector<8x32xf32>, vector<32x32xf32>, vector<8x32xf32> -> vector<8x32xf32>
    %225 = vector.broadcast %17 : vector<1x32xf32> to vector<8x32xf32>
    %226 = arith.addf %224, %225 : vector<8x32xf32>
    %227 = arith.index_cast %215 : i32 to index
    %c0_92 = arith.constant 0 : index
    %228 = vector.load %arg16[%227, %c0_92] : memref<64x32xf32, #tpu.memory_space<vmem>>, vector<8x32xf32>
    %229 = arith.addf %228, %220 : vector<8x32xf32>
    %230 = arith.negf %229 : vector<8x32xf32>
    %231 = math.exp %230 : vector<8x32xf32>
    %cst_93 = arith.constant 1.000000e+00 : f32
    %232 = vector.broadcast %cst_93 : f32 to vector<8x32xf32>
    %233 = arith.addf %232, %231 : vector<8x32xf32>
    %234 = arith.divf %232, %233 : vector<8x32xf32>
    %235 = arith.index_cast %215 : i32 to index
    %c0_94 = arith.constant 0 : index
    %236 = vector.load %arg17[%235, %c0_94] : memref<64x32xf32, #tpu.memory_space<vmem>>, vector<8x32xf32>
    %237 = arith.addf %236, %223 : vector<8x32xf32>
    %238 = arith.negf %237 : vector<8x32xf32>
    %239 = math.exp %238 : vector<8x32xf32>
    %cst_95 = arith.constant 1.000000e+00 : f32
    %240 = vector.broadcast %cst_95 : f32 to vector<8x32xf32>
    %241 = arith.addf %240, %239 : vector<8x32xf32>
    %242 = arith.divf %240, %241 : vector<8x32xf32>
    %243 = arith.index_cast %215 : i32 to index
    %c0_96 = arith.constant 0 : index
    %244 = vector.load %arg18[%243, %c0_96] : memref<64x32xf32, #tpu.memory_space<vmem>>, vector<8x32xf32>
    %245 = arith.mulf %234, %226 : vector<8x32xf32>
    %246 = arith.addf %244, %245 : vector<8x32xf32>
    %247 = math.tanh %246 : vector<8x32xf32>
    %cst_97 = arith.constant 1.000000e+00 : f32
    %248 = vector.broadcast %cst_97 : f32 to vector<8x32xf32>
    %249 = arith.subf %248, %242 : vector<8x32xf32>
    %250 = arith.mulf %249, %247 : vector<8x32xf32>
    %251 = arith.mulf %242, %214 : vector<8x32xf32>
    %252 = arith.addf %250, %251 : vector<8x32xf32>
    %253 = arith.mulf %252, %217 : vector<8x32xf32>
    %254 = arith.index_cast %215 : i32 to index
    %c0_98 = arith.constant 0 : index
    %255 = vector.load %arg19[%254, %c0_98] : memref<64x32xf32, #tpu.memory_space<vmem>>, vector<8x32xf32>
    tpu.vector_store %arg19[%254, %c0_98], %253 {strides = array<i32>} : memref<64x32xf32, #tpu.memory_space<vmem>>, vector<8x32xf32>,
    %c7_i32_99 = arith.constant 7 : i32
    %256 = arith.subi %c7_i32_99, %c4_i32 : i32
    %c8_i32_100 = arith.constant 8 : i32
    %257 = arith.muli %256, %c8_i32_100 : i32
    %258 = arith.index_cast %257 : i32 to index
    %c0_101 = arith.constant 0 : index
    %259 = vector.load %arg20[%258, %c0_101] : memref<64x32xf32, #tpu.memory_space<vmem>>, vector<8x32xf32>
    tpu.vector_store %arg20[%258, %c0_101], %253 {strides = array<i32>} : memref<64x32xf32, #tpu.memory_space<vmem>>, vector<8x32xf32>,
    %cst_102 = arith.constant 1.000000e+00 : f32
    %260 = vector.broadcast %cst_102 : f32 to vector<8x32xf32>
    %261 = arith.subf %260, %217 : vector<8x32xf32>
    %262 = arith.mulf %261, %214 : vector<8x32xf32>
    %263 = arith.addf %253, %262 : vector<8x32xf32>
    %c5_i32 = arith.constant 5 : i32
    %c8_i32_103 = arith.constant 8 : i32
    %264 = arith.muli %c5_i32, %c8_i32_103 : i32
    %265 = arith.index_cast %264 : i32 to index
    %c0_104 = arith.constant 0 : index
    %266 = vector.load %arg1[%265, %c0_104] : memref<64x32xf32, #tpu.memory_space<vmem>>, vector<8x32xf32>
    %cst_105 = arith.constant dense<0.000000e+00> : vector<8x32xf32>
    %267 = tpu.matmul %263, %12, %cst_105 {dimension_numbers = #tpu.dot_dimension_numbers<[1], [0], [0], [1], [0, 0, 1, 1], [], []>} : vector<8x32xf32>, vector<32x32xf32>, vector<8x32xf32> -> vector<8x32xf32>
    %268 = vector.broadcast %15 : vector<1x32xf32> to vector<8x32xf32>
    %269 = arith.addf %267, %268 : vector<8x32xf32>
    %cst_106 = arith.constant dense<0.000000e+00> : vector<8x32xf32>
    %270 = tpu.matmul %263, %13, %cst_106 {dimension_numbers = #tpu.dot_dimension_numbers<[1], [0], [0], [1], [0, 0, 1, 1], [], []>} : vector<8x32xf32>, vector<32x32xf32>, vector<8x32xf32> -> vector<8x32xf32>
    %271 = vector.broadcast %16 : vector<1x32xf32> to vector<8x32xf32>
    %272 = arith.addf %270, %271 : vector<8x32xf32>
    %cst_107 = arith.constant dense<0.000000e+00> : vector<8x32xf32>
    %273 = tpu.matmul %263, %14, %cst_107 {dimension_numbers = #tpu.dot_dimension_numbers<[1], [0], [0], [1], [0, 0, 1, 1], [], []>} : vector<8x32xf32>, vector<32x32xf32>, vector<8x32xf32> -> vector<8x32xf32>
    %274 = vector.broadcast %17 : vector<1x32xf32> to vector<8x32xf32>
    %275 = arith.addf %273, %274 : vector<8x32xf32>
    %276 = arith.index_cast %264 : i32 to index
    %c0_108 = arith.constant 0 : index
    %277 = vector.load %arg16[%276, %c0_108] : memref<64x32xf32, #tpu.memory_space<vmem>>, vector<8x32xf32>
    %278 = arith.addf %277, %269 : vector<8x32xf32>
    %279 = arith.negf %278 : vector<8x32xf32>
    %280 = math.exp %279 : vector<8x32xf32>
    %cst_109 = arith.constant 1.000000e+00 : f32
    %281 = vector.broadcast %cst_109 : f32 to vector<8x32xf32>
    %282 = arith.addf %281, %280 : vector<8x32xf32>
    %283 = arith.divf %281, %282 : vector<8x32xf32>
    %284 = arith.index_cast %264 : i32 to index
    %c0_110 = arith.constant 0 : index
    %285 = vector.load %arg17[%284, %c0_110] : memref<64x32xf32, #tpu.memory_space<vmem>>, vector<8x32xf32>
    %286 = arith.addf %285, %272 : vector<8x32xf32>
    %287 = arith.negf %286 : vector<8x32xf32>
    %288 = math.exp %287 : vector<8x32xf32>
    %cst_111 = arith.constant 1.000000e+00 : f32
    %289 = vector.broadcast %cst_111 : f32 to vector<8x32xf32>
    %290 = arith.addf %289, %288 : vector<8x32xf32>
    %291 = arith.divf %289, %290 : vector<8x32xf32>
    %292 = arith.index_cast %264 : i32 to index
    %c0_112 = arith.constant 0 : index
    %293 = vector.load %arg18[%292, %c0_112] : memref<64x32xf32, #tpu.memory_space<vmem>>, vector<8x32xf32>
    %294 = arith.mulf %283, %275 : vector<8x32xf32>
    %295 = arith.addf %293, %294 : vector<8x32xf32>
    %296 = math.tanh %295 : vector<8x32xf32>
    %cst_113 = arith.constant 1.000000e+00 : f32
    %297 = vector.broadcast %cst_113 : f32 to vector<8x32xf32>
    %298 = arith.subf %297, %291 : vector<8x32xf32>
    %299 = arith.mulf %298, %296 : vector<8x32xf32>
    %300 = arith.mulf %291, %263 : vector<8x32xf32>
    %301 = arith.addf %299, %300 : vector<8x32xf32>
    %302 = arith.mulf %301, %266 : vector<8x32xf32>
    %303 = arith.index_cast %264 : i32 to index
    %c0_114 = arith.constant 0 : index
    %304 = vector.load %arg19[%303, %c0_114] : memref<64x32xf32, #tpu.memory_space<vmem>>, vector<8x32xf32>
    tpu.vector_store %arg19[%303, %c0_114], %302 {strides = array<i32>} : memref<64x32xf32, #tpu.memory_space<vmem>>, vector<8x32xf32>,
    %c7_i32_115 = arith.constant 7 : i32
    %305 = arith.subi %c7_i32_115, %c5_i32 : i32
    %c8_i32_116 = arith.constant 8 : i32
    %306 = arith.muli %305, %c8_i32_116 : i32
    %307 = arith.index_cast %306 : i32 to index
    %c0_117 = arith.constant 0 : index
    %308 = vector.load %arg20[%307, %c0_117] : memref<64x32xf32, #tpu.memory_space<vmem>>, vector<8x32xf32>
    tpu.vector_store %arg20[%307, %c0_117], %302 {strides = array<i32>} : memref<64x32xf32, #tpu.memory_space<vmem>>, vector<8x32xf32>,
    %cst_118 = arith.constant 1.000000e+00 : f32
    %309 = vector.broadcast %cst_118 : f32 to vector<8x32xf32>
    %310 = arith.subf %309, %266 : vector<8x32xf32>
    %311 = arith.mulf %310, %263 : vector<8x32xf32>
    %312 = arith.addf %302, %311 : vector<8x32xf32>
    %c6_i32 = arith.constant 6 : i32
    %c8_i32_119 = arith.constant 8 : i32
    %313 = arith.muli %c6_i32, %c8_i32_119 : i32
    %314 = arith.index_cast %313 : i32 to index
    %c0_120 = arith.constant 0 : index
    %315 = vector.load %arg1[%314, %c0_120] : memref<64x32xf32, #tpu.memory_space<vmem>>, vector<8x32xf32>
    %cst_121 = arith.constant dense<0.000000e+00> : vector<8x32xf32>
    %316 = tpu.matmul %312, %12, %cst_121 {dimension_numbers = #tpu.dot_dimension_numbers<[1], [0], [0], [1], [0, 0, 1, 1], [], []>} : vector<8x32xf32>, vector<32x32xf32>, vector<8x32xf32> -> vector<8x32xf32>
    %317 = vector.broadcast %15 : vector<1x32xf32> to vector<8x32xf32>
    %318 = arith.addf %316, %317 : vector<8x32xf32>
    %cst_122 = arith.constant dense<0.000000e+00> : vector<8x32xf32>
    %319 = tpu.matmul %312, %13, %cst_122 {dimension_numbers = #tpu.dot_dimension_numbers<[1], [0], [0], [1], [0, 0, 1, 1], [], []>} : vector<8x32xf32>, vector<32x32xf32>, vector<8x32xf32> -> vector<8x32xf32>
    %320 = vector.broadcast %16 : vector<1x32xf32> to vector<8x32xf32>
    %321 = arith.addf %319, %320 : vector<8x32xf32>
    %cst_123 = arith.constant dense<0.000000e+00> : vector<8x32xf32>
    %322 = tpu.matmul %312, %14, %cst_123 {dimension_numbers = #tpu.dot_dimension_numbers<[1], [0], [0], [1], [0, 0, 1, 1], [], []>} : vector<8x32xf32>, vector<32x32xf32>, vector<8x32xf32> -> vector<8x32xf32>
    %323 = vector.broadcast %17 : vector<1x32xf32> to vector<8x32xf32>
    %324 = arith.addf %322, %323 : vector<8x32xf32>
    %325 = arith.index_cast %313 : i32 to index
    %c0_124 = arith.constant 0 : index
    %326 = vector.load %arg16[%325, %c0_124] : memref<64x32xf32, #tpu.memory_space<vmem>>, vector<8x32xf32>
    %327 = arith.addf %326, %318 : vector<8x32xf32>
    %328 = arith.negf %327 : vector<8x32xf32>
    %329 = math.exp %328 : vector<8x32xf32>
    %cst_125 = arith.constant 1.000000e+00 : f32
    %330 = vector.broadcast %cst_125 : f32 to vector<8x32xf32>
    %331 = arith.addf %330, %329 : vector<8x32xf32>
    %332 = arith.divf %330, %331 : vector<8x32xf32>
    %333 = arith.index_cast %313 : i32 to index
    %c0_126 = arith.constant 0 : index
    %334 = vector.load %arg17[%333, %c0_126] : memref<64x32xf32, #tpu.memory_space<vmem>>, vector<8x32xf32>
    %335 = arith.addf %334, %321 : vector<8x32xf32>
    %336 = arith.negf %335 : vector<8x32xf32>
    %337 = math.exp %336 : vector<8x32xf32>
    %cst_127 = arith.constant 1.000000e+00 : f32
    %338 = vector.broadcast %cst_127 : f32 to vector<8x32xf32>
    %339 = arith.addf %338, %337 : vector<8x32xf32>
    %340 = arith.divf %338, %339 : vector<8x32xf32>
    %341 = arith.index_cast %313 : i32 to index
    %c0_128 = arith.constant 0 : index
    %342 = vector.load %arg18[%341, %c0_128] : memref<64x32xf32, #tpu.memory_space<vmem>>, vector<8x32xf32>
    %343 = arith.mulf %332, %324 : vector<8x32xf32>
    %344 = arith.addf %342, %343 : vector<8x32xf32>
    %345 = math.tanh %344 : vector<8x32xf32>
    %cst_129 = arith.constant 1.000000e+00 : f32
    %346 = vector.broadcast %cst_129 : f32 to vector<8x32xf32>
    %347 = arith.subf %346, %340 : vector<8x32xf32>
    %348 = arith.mulf %347, %345 : vector<8x32xf32>
    %349 = arith.mulf %340, %312 : vector<8x32xf32>
    %350 = arith.addf %348, %349 : vector<8x32xf32>
    %351 = arith.mulf %350, %315 : vector<8x32xf32>
    %352 = arith.index_cast %313 : i32 to index
    %c0_130 = arith.constant 0 : index
    %353 = vector.load %arg19[%352, %c0_130] : memref<64x32xf32, #tpu.memory_space<vmem>>, vector<8x32xf32>
    tpu.vector_store %arg19[%352, %c0_130], %351 {strides = array<i32>} : memref<64x32xf32, #tpu.memory_space<vmem>>, vector<8x32xf32>,
    %c7_i32_131 = arith.constant 7 : i32
    %354 = arith.subi %c7_i32_131, %c6_i32 : i32
    %c8_i32_132 = arith.constant 8 : i32
    %355 = arith.muli %354, %c8_i32_132 : i32
    %356 = arith.index_cast %355 : i32 to index
    %c0_133 = arith.constant 0 : index
    %357 = vector.load %arg20[%356, %c0_133] : memref<64x32xf32, #tpu.memory_space<vmem>>, vector<8x32xf32>
    tpu.vector_store %arg20[%356, %c0_133], %351 {strides = array<i32>} : memref<64x32xf32, #tpu.memory_space<vmem>>, vector<8x32xf32>,
    %cst_134 = arith.constant 1.000000e+00 : f32
    %358 = vector.broadcast %cst_134 : f32 to vector<8x32xf32>
    %359 = arith.subf %358, %315 : vector<8x32xf32>
    %360 = arith.mulf %359, %312 : vector<8x32xf32>
    %361 = arith.addf %351, %360 : vector<8x32xf32>
    %c7_i32_135 = arith.constant 7 : i32
    %c8_i32_136 = arith.constant 8 : i32
    %362 = arith.muli %c7_i32_135, %c8_i32_136 : i32
    %363 = arith.index_cast %362 : i32 to index
    %c0_137 = arith.constant 0 : index
    %364 = vector.load %arg1[%363, %c0_137] : memref<64x32xf32, #tpu.memory_space<vmem>>, vector<8x32xf32>
    %cst_138 = arith.constant dense<0.000000e+00> : vector<8x32xf32>
    %365 = tpu.matmul %361, %12, %cst_138 {dimension_numbers = #tpu.dot_dimension_numbers<[1], [0], [0], [1], [0, 0, 1, 1], [], []>} : vector<8x32xf32>, vector<32x32xf32>, vector<8x32xf32> -> vector<8x32xf32>
    %366 = vector.broadcast %15 : vector<1x32xf32> to vector<8x32xf32>
    %367 = arith.addf %365, %366 : vector<8x32xf32>
    %cst_139 = arith.constant dense<0.000000e+00> : vector<8x32xf32>
    %368 = tpu.matmul %361, %13, %cst_139 {dimension_numbers = #tpu.dot_dimension_numbers<[1], [0], [0], [1], [0, 0, 1, 1], [], []>} : vector<8x32xf32>, vector<32x32xf32>, vector<8x32xf32> -> vector<8x32xf32>
    %369 = vector.broadcast %16 : vector<1x32xf32> to vector<8x32xf32>
    %370 = arith.addf %368, %369 : vector<8x32xf32>
    %cst_140 = arith.constant dense<0.000000e+00> : vector<8x32xf32>
    %371 = tpu.matmul %361, %14, %cst_140 {dimension_numbers = #tpu.dot_dimension_numbers<[1], [0], [0], [1], [0, 0, 1, 1], [], []>} : vector<8x32xf32>, vector<32x32xf32>, vector<8x32xf32> -> vector<8x32xf32>
    %372 = vector.broadcast %17 : vector<1x32xf32> to vector<8x32xf32>
    %373 = arith.addf %371, %372 : vector<8x32xf32>
    %374 = arith.index_cast %362 : i32 to index
    %c0_141 = arith.constant 0 : index
    %375 = vector.load %arg16[%374, %c0_141] : memref<64x32xf32, #tpu.memory_space<vmem>>, vector<8x32xf32>
    %376 = arith.addf %375, %367 : vector<8x32xf32>
    %377 = arith.negf %376 : vector<8x32xf32>
    %378 = math.exp %377 : vector<8x32xf32>
    %cst_142 = arith.constant 1.000000e+00 : f32
    %379 = vector.broadcast %cst_142 : f32 to vector<8x32xf32>
    %380 = arith.addf %379, %378 : vector<8x32xf32>
    %381 = arith.divf %379, %380 : vector<8x32xf32>
    %382 = arith.index_cast %362 : i32 to index
    %c0_143 = arith.constant 0 : index
    %383 = vector.load %arg17[%382, %c0_143] : memref<64x32xf32, #tpu.memory_space<vmem>>, vector<8x32xf32>
    %384 = arith.addf %383, %370 : vector<8x32xf32>
    %385 = arith.negf %384 : vector<8x32xf32>
    %386 = math.exp %385 : vector<8x32xf32>
    %cst_144 = arith.constant 1.000000e+00 : f32
    %387 = vector.broadcast %cst_144 : f32 to vector<8x32xf32>
    %388 = arith.addf %387, %386 : vector<8x32xf32>
    %389 = arith.divf %387, %388 : vector<8x32xf32>
    %390 = arith.index_cast %362 : i32 to index
    %c0_145 = arith.constant 0 : index
    %391 = vector.load %arg18[%390, %c0_145] : memref<64x32xf32, #tpu.memory_space<vmem>>, vector<8x32xf32>
    %392 = arith.mulf %381, %373 : vector<8x32xf32>
    %393 = arith.addf %391, %392 : vector<8x32xf32>
    %394 = math.tanh %393 : vector<8x32xf32>
    %cst_146 = arith.constant 1.000000e+00 : f32
    %395 = vector.broadcast %cst_146 : f32 to vector<8x32xf32>
    %396 = arith.subf %395, %389 : vector<8x32xf32>
    %397 = arith.mulf %396, %394 : vector<8x32xf32>
    %398 = arith.mulf %389, %361 : vector<8x32xf32>
    %399 = arith.addf %397, %398 : vector<8x32xf32>
    %400 = arith.mulf %399, %364 : vector<8x32xf32>
    %401 = arith.index_cast %362 : i32 to index
    %c0_147 = arith.constant 0 : index
    %402 = vector.load %arg19[%401, %c0_147] : memref<64x32xf32, #tpu.memory_space<vmem>>, vector<8x32xf32>
    tpu.vector_store %arg19[%401, %c0_147], %400 {strides = array<i32>} : memref<64x32xf32, #tpu.memory_space<vmem>>, vector<8x32xf32>,
    %c7_i32_148 = arith.constant 7 : i32
    %403 = arith.subi %c7_i32_148, %c7_i32_135 : i32
    %c8_i32_149 = arith.constant 8 : i32
    %404 = arith.muli %403, %c8_i32_149 : i32
    %405 = arith.index_cast %404 : i32 to index
    %c0_150 = arith.constant 0 : index
    %406 = vector.load %arg20[%405, %c0_150] : memref<64x32xf32, #tpu.memory_space<vmem>>, vector<8x32xf32>
    tpu.vector_store %arg20[%405, %c0_150], %400 {strides = array<i32>} : memref<64x32xf32, #tpu.memory_space<vmem>>, vector<8x32xf32>,
    %cst_151 = arith.constant 1.000000e+00 : f32
    %407 = vector.broadcast %cst_151 : f32 to vector<8x32xf32>
    %408 = arith.subf %407, %364 : vector<8x32xf32>
    %409 = arith.mulf %408, %361 : vector<8x32xf32>
    %410 = arith.addf %400, %409 : vector<8x32xf32>
    %c8_i32_152 = arith.constant 8 : i32
    %c0_153 = arith.constant 0 : index
    %c0_154 = arith.constant 0 : index
    %411 = vector.load %arg19[%c0_153, %c0_154] : memref<64x32xf32, #tpu.memory_space<vmem>>, vector<64x32xf32>
    %412 = vector.extract_strided_slice %411 {offsets = [0, 0], sizes = [64, 16], strides = [1, 1]} : vector<64x32xf32> to vector<64x16xf32>
    %c0_155 = arith.constant 0 : index
    %c0_156 = arith.constant 0 : index
    %413 = vector.load %arg20[%c0_155, %c0_156] : memref<64x32xf32, #tpu.memory_space<vmem>>, vector<64x32xf32>
    %414 = vector.extract_strided_slice %413 {offsets = [0, 16], sizes = [64, 16], strides = [1, 1]} : vector<64x32xf32> to vector<64x16xf32>
    %c0_157 = arith.constant 0 : index
    %c0_158 = arith.constant 0 : index
    %415 = vector.load %arg11[%c0_157, %c0_158] : memref<16x32xf32, #tpu.memory_space<vmem>>, vector<16x32xf32>
    %cst_159 = arith.constant dense<0.000000e+00> : vector<64x32xf32>
    %416 = tpu.matmul %412, %415, %cst_159 {dimension_numbers = #tpu.dot_dimension_numbers<[1], [0], [0], [1], [0, 0, 1, 1], [], []>} : vector<64x16xf32>, vector<16x32xf32>, vector<64x32xf32> -> vector<64x32xf32>
    %c0_160 = arith.constant 0 : index
    %c0_161 = arith.constant 0 : index
    %417 = vector.load %arg12[%c0_160, %c0_161] : memref<16x32xf32, #tpu.memory_space<vmem>>, vector<16x32xf32>
    %cst_162 = arith.constant dense<0.000000e+00> : vector<64x32xf32>
    %418 = tpu.matmul %414, %417, %cst_162 {dimension_numbers = #tpu.dot_dimension_numbers<[1], [0], [0], [1], [0, 0, 1, 1], [], []>} : vector<64x16xf32>, vector<16x32xf32>, vector<64x32xf32> -> vector<64x32xf32>
    %419 = arith.addf %416, %418 : vector<64x32xf32>
    %c0_163 = arith.constant 0 : index
    %c0_164 = arith.constant 0 : index
    %420 = vector.load %arg13[%c0_163, %c0_164] : memref<1x32xf32, #tpu.memory_space<vmem>>, vector<1x32xf32>
    %421 = vector.broadcast %420 : vector<1x32xf32> to vector<64x32xf32>
    %422 = arith.addf %419, %421 : vector<64x32xf32>
    %423 = math.tanh %422 : vector<64x32xf32>
    %c0_165 = arith.constant 0 : index
    %c0_166 = arith.constant 0 : index
    %424 = vector.load %arg1[%c0_165, %c0_166] : memref<64x32xf32, #tpu.memory_space<vmem>>, vector<64x32xf32>
    %425 = vector.extract_strided_slice %424 {offsets = [0, 0], sizes = [64, 1], strides = [1, 1]} : vector<64x32xf32> to vector<64x1xf32>
    %426 = vector.broadcast %425 : vector<64x1xf32> to vector<64x32xf32>
    %427 = arith.mulf %423, %426 : vector<64x32xf32>
    %c0_167 = arith.constant 0 : index
    %c0_168 = arith.constant 0 : index
    %428 = vector.load %arg14[%c0_167, %c0_168] : memref<8x32xf32, #tpu.memory_space<vmem>>, vector<8x32xf32>
    %429 = vector.extract_strided_slice %427 {offsets = [0, 0], sizes = [8, 32], strides = [1, 1]} : vector<64x32xf32> to vector<8x32xf32>
    %430 = vector.extract_strided_slice %427 {offsets = [8, 0], sizes = [8, 32], strides = [1, 1]} : vector<64x32xf32> to vector<8x32xf32>
    %431 = vector.extract_strided_slice %427 {offsets = [16, 0], sizes = [8, 32], strides = [1, 1]} : vector<64x32xf32> to vector<8x32xf32>
    %432 = vector.extract_strided_slice %427 {offsets = [24, 0], sizes = [8, 32], strides = [1, 1]} : vector<64x32xf32> to vector<8x32xf32>
    %433 = vector.extract_strided_slice %427 {offsets = [32, 0], sizes = [8, 32], strides = [1, 1]} : vector<64x32xf32> to vector<8x32xf32>
    %434 = vector.extract_strided_slice %427 {offsets = [40, 0], sizes = [8, 32], strides = [1, 1]} : vector<64x32xf32> to vector<8x32xf32>
    %435 = vector.extract_strided_slice %427 {offsets = [48, 0], sizes = [8, 32], strides = [1, 1]} : vector<64x32xf32> to vector<8x32xf32>
    %436 = vector.extract_strided_slice %427 {offsets = [56, 0], sizes = [8, 32], strides = [1, 1]} : vector<64x32xf32> to vector<8x32xf32>
    %437 = arith.mulf %429, %428 : vector<8x32xf32>
    %cst_169 = arith.constant dense<0.000000e+00> : vector<8xf32>
    %438 = vector.multi_reduction <add>, %437, %cst_169 [1] : vector<8x32xf32> to vector<8xf32>
    %439 = vector.shape_cast %438 : vector<8xf32> to vector<8x1xf32>
    %440 = arith.mulf %430, %428 : vector<8x32xf32>
    %cst_170 = arith.constant dense<0.000000e+00> : vector<8xf32>
    %441 = vector.multi_reduction <add>, %440, %cst_170 [1] : vector<8x32xf32> to vector<8xf32>
    %442 = vector.shape_cast %441 : vector<8xf32> to vector<8x1xf32>
    %443 = arith.mulf %431, %428 : vector<8x32xf32>
    %cst_171 = arith.constant dense<0.000000e+00> : vector<8xf32>
    %444 = vector.multi_reduction <add>, %443, %cst_171 [1] : vector<8x32xf32> to vector<8xf32>
    %445 = vector.shape_cast %444 : vector<8xf32> to vector<8x1xf32>
    %446 = arith.mulf %432, %428 : vector<8x32xf32>
    %cst_172 = arith.constant dense<0.000000e+00> : vector<8xf32>
    %447 = vector.multi_reduction <add>, %446, %cst_172 [1] : vector<8x32xf32> to vector<8xf32>
    %448 = vector.shape_cast %447 : vector<8xf32> to vector<8x1xf32>
    %449 = arith.mulf %433, %428 : vector<8x32xf32>
    %cst_173 = arith.constant dense<0.000000e+00> : vector<8xf32>
    %450 = vector.multi_reduction <add>, %449, %cst_173 [1] : vector<8x32xf32> to vector<8xf32>
    %451 = vector.shape_cast %450 : vector<8xf32> to vector<8x1xf32>
    %452 = arith.mulf %434, %428 : vector<8x32xf32>
    %cst_174 = arith.constant dense<0.000000e+00> : vector<8xf32>
    %453 = vector.multi_reduction <add>, %452, %cst_174 [1] : vector<8x32xf32> to vector<8xf32>
    %454 = vector.shape_cast %453 : vector<8xf32> to vector<8x1xf32>
    %455 = arith.mulf %435, %428 : vector<8x32xf32>
    %cst_175 = arith.constant dense<0.000000e+00> : vector<8xf32>
    %456 = vector.multi_reduction <add>, %455, %cst_175 [1] : vector<8x32xf32> to vector<8xf32>
    %457 = vector.shape_cast %456 : vector<8xf32> to vector<8x1xf32>
    %458 = arith.mulf %436, %428 : vector<8x32xf32>
    %cst_176 = arith.constant dense<0.000000e+00> : vector<8xf32>
    %459 = vector.multi_reduction <add>, %458, %cst_176 [1] : vector<8x32xf32> to vector<8xf32>
    %460 = vector.shape_cast %459 : vector<8xf32> to vector<8x1xf32>
    %461 = arith.maximumf %439, %442 : vector<8x1xf32>
    %462 = arith.maximumf %461, %445 : vector<8x1xf32>
    %463 = arith.maximumf %462, %448 : vector<8x1xf32>
    %464 = arith.maximumf %463, %451 : vector<8x1xf32>
    %465 = arith.maximumf %464, %454 : vector<8x1xf32>
    %466 = arith.maximumf %465, %457 : vector<8x1xf32>
    %467 = arith.maximumf %466, %460 : vector<8x1xf32>
    %468 = arith.subf %439, %467 : vector<8x1xf32>
    %469 = math.exp %468 : vector<8x1xf32>
    %470 = arith.subf %442, %467 : vector<8x1xf32>
    %471 = math.exp %470 : vector<8x1xf32>
    %472 = arith.subf %445, %467 : vector<8x1xf32>
    %473 = math.exp %472 : vector<8x1xf32>
    %474 = arith.subf %448, %467 : vector<8x1xf32>
    %475 = math.exp %474 : vector<8x1xf32>
    %476 = arith.subf %451, %467 : vector<8x1xf32>
    %477 = math.exp %476 : vector<8x1xf32>
    %478 = arith.subf %454, %467 : vector<8x1xf32>
    %479 = math.exp %478 : vector<8x1xf32>
    %480 = arith.subf %457, %467 : vector<8x1xf32>
    %481 = math.exp %480 : vector<8x1xf32>
    %482 = arith.subf %460, %467 : vector<8x1xf32>
    %483 = math.exp %482 : vector<8x1xf32>
    %484 = arith.addf %469, %471 : vector<8x1xf32>
    %485 = arith.addf %484, %473 : vector<8x1xf32>
    %486 = arith.addf %485, %475 : vector<8x1xf32>
    %487 = arith.addf %486, %477 : vector<8x1xf32>
    %488 = arith.addf %487, %479 : vector<8x1xf32>
    %489 = arith.addf %488, %481 : vector<8x1xf32>
    %490 = arith.addf %489, %483 : vector<8x1xf32>
    %491 = tpu.reciprocal %490 {approx = true} : vector<8x1xf32> -> vector<8x1xf32>
    %cst_177 = arith.constant 0.000000e+00 : f32
    %492 = vector.broadcast %cst_177 : f32 to vector<8x32xf32>
    %493 = arith.mulf %469, %491 : vector<8x1xf32>
    %494 = vector.broadcast %493 : vector<8x1xf32> to vector<8x32xf32>
    %495 = arith.mulf %429, %494 : vector<8x32xf32>
    %496 = arith.addf %492, %495 : vector<8x32xf32>
    %497 = arith.mulf %471, %491 : vector<8x1xf32>
    %498 = vector.broadcast %497 : vector<8x1xf32> to vector<8x32xf32>
    %499 = arith.mulf %430, %498 : vector<8x32xf32>
    %500 = arith.addf %496, %499 : vector<8x32xf32>
    %501 = arith.mulf %473, %491 : vector<8x1xf32>
    %502 = vector.broadcast %501 : vector<8x1xf32> to vector<8x32xf32>
    %503 = arith.mulf %431, %502 : vector<8x32xf32>
    %504 = arith.addf %500, %503 : vector<8x32xf32>
    %505 = arith.mulf %475, %491 : vector<8x1xf32>
    %506 = vector.broadcast %505 : vector<8x1xf32> to vector<8x32xf32>
    %507 = arith.mulf %432, %506 : vector<8x32xf32>
    %508 = arith.addf %504, %507 : vector<8x32xf32>
    %509 = arith.mulf %477, %491 : vector<8x1xf32>
    %510 = vector.broadcast %509 : vector<8x1xf32> to vector<8x32xf32>
    %511 = arith.mulf %433, %510 : vector<8x32xf32>
    %512 = arith.addf %508, %511 : vector<8x32xf32>
    %513 = arith.mulf %479, %491 : vector<8x1xf32>
    %514 = vector.broadcast %513 : vector<8x1xf32> to vector<8x32xf32>
    %515 = arith.mulf %434, %514 : vector<8x32xf32>
    %516 = arith.addf %512, %515 : vector<8x32xf32>
    %517 = arith.mulf %481, %491 : vector<8x1xf32>
    %518 = vector.broadcast %517 : vector<8x1xf32> to vector<8x32xf32>
    %519 = arith.mulf %435, %518 : vector<8x32xf32>
    %520 = arith.addf %516, %519 : vector<8x32xf32>
    %521 = arith.mulf %483, %491 : vector<8x1xf32>
    %522 = vector.broadcast %521 : vector<8x1xf32> to vector<8x32xf32>
    %523 = arith.mulf %436, %522 : vector<8x32xf32>
    %524 = arith.addf %520, %523 : vector<8x32xf32>
    %c0_178 = arith.constant 0 : index
    %c0_179 = arith.constant 0 : index
    %525 = vector.load %arg15[%c0_178, %c0_179] : memref<8x32xf32, #tpu.memory_space<vmem>>, vector<8x32xf32>
    tpu.vector_store %arg15[%c0_178, %c0_179], %524 {strides = array<i32>} : memref<8x32xf32, #tpu.memory_space<vmem>>, vector<8x32xf32>,
    return
  }
}

</mosaic_0001>

<bundles_post_ra>
// kernel: tpu_custom_call.1
= control target key start
LH: loop header
LB: loop body
LE: loop exit
PB: predicated region body
PF: predicated region fallthrough
CT: control target
= control target key end

     0   :  { %20 = vsyncpa [#allocation8], 0  ;;  %s4565_s0 = inlined_call_operand.vmem [shape: f32[64,64], index: 0, kind: input, shape index: {}]   ;;  %s4566_s1 = inlined_call_operand.vmem [shape: f32[64,32], index: 1, kind: input, shape index: {}]   ;;  %s4567_s2 = inlined_call_operand.hbm [shape: f32[8,32], index: 2, kind: input, shape index: {}]   ;;  %s4568_s3 = inlined_call_operand.hbm [shape: f32[64,96], index: 3, kind: input, shape index: {}]   ;;  %s4569_s4 = inlined_call_operand.hbm [shape: f32[1,96], index: 4, kind: input, shape index: {}]   ;;  %s4570_s5 = inlined_call_operand.vmem [shape: f32[32,32], index: 5, kind: input, shape index: {}]   ;;  %s4571_s6 = inlined_call_operand.hbm [shape: f32[32,32], index: 6, kind: input, shape index: {}]   ;;  %s4572_s7 = inlined_call_operand.hbm [shape: f32[32,32], index: 7, kind: input, shape index: {}]   ;;  %s4573_s8 = inlined_call_operand.hbm [shape: f32[1,32], index: 8, kind: input, shape index: {}]   ;;  %s4574_s9 = inlined_call_operand.hbm [shape: f32[1,32], index: 9, kind: input, shape index: {}]   ;;  %s4575_s10 = inlined_call_operand.vmem [shape: f32[1,32], index: 10, kind: input, shape index: {}]   ;;  %s4576_s11 = inlined_call_operand.vmem [shape: f32[16,32], index: 11, kind: input, shape index: {}]   ;;  %s4577_s12 = inlined_call_operand.hbm [shape: f32[16,32], index: 12, kind: input, shape index: {}]   ;;  %s4578_s13 = inlined_call_operand.hbm [shape: f32[1,32], index: 13, kind: input, shape index: {}]   ;;  %s4579_s14 = inlined_call_operand.vmem [shape: f32[8,32], index: 14, kind: input, shape index: {}]   ;;  %s4580_s15 = inlined_call_operand.hbm [shape: f32[8,32], index: 15, kind: output, shape index: {}]  }
   0x1   :  { %21 = vsyncpa [#allocation11], 0 }
   0x2   :  { %22 = vsyncpa [#allocation14], 0 }
   0x3   :  { %23 = vsyncpa [#allocation17], 0 }
   0x4   :  { %24 = vsyncpa [#allocation20], 0 }
   0x5   :  { %25 = vsyncpa [#allocation9], 0  ;;  %s3784_s18 = smov [#allocation10]  }
   0x6   :  { %s45_s19 = sshll.u32 %s3784_s18, 4  ;;  %s46_s19 = int_to_ptr.vmem [resolvable:$true] %s45_s19 }
   0x7   :  { %s3580_s20 = scalar_lea.vmem %s46_s19, 1024  ;;  %p3585_p1 = scmp.lt.s32.totalorder %s46_s19, %s46_s19 }
   0x8   :  { %p3581_p0 = scmp.ne.s32.totalorder %s46_s19, %s3580_s20  ;;  %p3586_p2 = scmp.lt.s32.totalorder %s3580_s20, %s3580_s20 }
   0xa   :  { %p3587_p3 = por %p3586_p2, %p3585_p1 }
   0xc   :  { %p3588_p4 = pnand %p3587_p3, %p3581_p0 }
   0xe   :  { %3591 = shalt.err (!%p3588_p4)
}
   0xf   :  { %s3785_s21 = smov 128   ;;  %s3786_s22 = smov 8  }
  0x10   :  { %51 = dma.hbm_to_vmem [thread:$0]  %s4568_s3, 1024, %s46_s19, [#allocation11], %s3785_s21, %s3785_s21, %s3786_s22  }
  0x11   :  { %s3787_s25 = smov [#allocation13]   ;;  %s3788_s27 = smov [#allocation16]  }
  0x12   :  { %s69_s26 = sshll.u32 %s3787_s25, 4  ;;  %s94_s28 = sshll.u32 %s3788_s27, 4  ;;  %s70_s26 = int_to_ptr.vmem [resolvable:$true] %s69_s26  ;;  %s95_s28 = int_to_ptr.vmem [resolvable:$true] %s94_s28 }
  0x13   :  { %s3600_s29 = scalar_lea.vmem %s70_s26, 512  ;;  %p3605_p6 = scmp.lt.s32.totalorder %s70_s26, %s70_s26 }
  0x14   :  { %p3601_p5 = scmp.ne.s32.totalorder %s70_s26, %s3600_s29  ;;  %p3606_p7 = scmp.lt.s32.totalorder %s3600_s29, %s3600_s29 }
  0x16   :  { %p3607_p8 = por %p3606_p7, %p3605_p6 }
  0x18   :  { %p3608_p9 = pnand %p3607_p8, %p3601_p5 }
  0x1a   :  { %3611 = shalt.err (!%p3608_p9)
}
  0x1b   :  { %75 = dma.hbm_to_vmem [thread:$0]  %s4571_s6, 512, %s70_s26, [#allocation14], %s3785_s21, %s3785_s21, %s3786_s22  }
  0x1c   :  { %s3620_s3 = scalar_lea.vmem %s95_s28, 16  ;;  %s3624_s17 = scalar_lea.vmem %s95_s28, 32 }
  0x1d   :  { %p3621_p10 = scmp.ne.s32.totalorder %s95_s28, %s3620_s3  ;;  %p3625_p11 = scmp.lt.s32.totalorder %s95_s28, %s95_s28 }
  0x1e   :  { %p3626_p12 = scmp.lt.s32.totalorder %s3624_s17, %s3620_s3 }
  0x20   :  { %p3627_p13 = por %p3626_p12, %p3625_p11 }
  0x22   :  { %p3628_p0 = pnand %p3627_p13, %p3621_p10 }
  0x24   :  { %3631 = shalt.err (!%p3628_p0)
}
  0x25   :  { %97 = dma.hbm_to_vmem [thread:$0]  %s4573_s8, 16, %s95_s28, [#allocation17]  }
  0x26   :  { %s3789_s20 = smov [#allocation19]   ;;  %s3790_s24 = smov [#allocation7]  }
  0x27   :  { %s117_s23 = sshll.u32 %s3789_s20, 4  ;;  %s36_s25 = sshll.u32 %s3790_s24, 4  ;;  %s118_s23 = int_to_ptr.vmem [resolvable:$true] %s117_s23  ;;  %s37_s25 = int_to_ptr.vmem [resolvable:$true] %s36_s25 }
  0x28   :  { %s3640_s27 = scalar_lea.vmem %s118_s23, 256  ;;  %p3645_p2 = scmp.lt.s32.totalorder %s118_s23, %s118_s23 }
  0x29   :  { %p3641_p1 = scmp.ne.s32.totalorder %s118_s23, %s3640_s27  ;;  %p3646_p3 = scmp.lt.s32.totalorder %s3640_s27, %s3640_s27 }
  0x2b   :  { %p3647_p4 = por %p3646_p3, %p3645_p2 }
  0x2d   :  { %p3648_p5 = pnand %p3647_p4, %p3641_p1 }
  0x2f   :  { %3651 = shalt.err (!%p3648_p5)
}
  0x30   :  { %123 = dma.hbm_to_vmem [thread:$0]  %s4577_s12, 256, %s118_s23, [#allocation20], %s3785_s21, %s3785_s21, %s3786_s22  }
  0x31   :  { %s3660_s8 = scalar_lea.vmem %s37_s25, 128  ;;  %p3665_p7 = scmp.lt.s32.totalorder %s37_s25, %s37_s25 }
  0x32   :  { %p3661_p6 = scmp.ne.s32.totalorder %s37_s25, %s3660_s8  ;;  %p3666_p8 = scmp.lt.s32.totalorder %s3660_s8, %s3660_s8 }
  0x34   :  { %p3667_p9 = por %p3666_p8, %p3665_p7 }
  0x36   :  { %p3668_p10 = pnand %p3667_p9, %p3661_p6 }
  0x38   :  { %3671 = shalt.err (!%p3668_p10)
}
  0x39   :  { %39 = dma.hbm_to_vmem [thread:$0]  %s4567_s2, 128, %s37_s25, [#allocation8]  }
  0x3a   :  { %s3791_s30 = smov [#allocation12]   ;;  %s3792_s3 = smov [#allocation15]  }
  0x3b   :  { %s58_s16 = sshll.u32 %s3791_s30, 4  ;;  %s81_s17 = sshll.u32 %s3792_s3, 4  ;;  %s59_s16 = int_to_ptr.vmem [resolvable:$true] %s58_s16  ;;  %s82_s17 = int_to_ptr.vmem [resolvable:$true] %s81_s17 }
  0x3c   :  { %s3680_s18 = scalar_lea.vmem %s59_s16, 16  ;;  %s3684_s12 = scalar_lea.vmem %s59_s16, 32 }
  0x3d   :  { %p3681_p11 = scmp.ne.s32.totalorder %s59_s16, %s3680_s18  ;;  %p3685_p12 = scmp.lt.s32.totalorder %s59_s16, %s59_s16 }
  0x3e   :  { %p3686_p13 = scmp.lt.s32.totalorder %s3684_s12, %s3680_s18 }
  0x40   :  { %p3687_p0 = por %p3686_p13, %p3685_p12 }
  0x42   :  { %p3688_p1 = pnand %p3687_p0, %p3681_p11 }
  0x44   :  { %3691 = shalt.err (!%p3688_p1)
}
  0x45   :  { %61 = dma.hbm_to_vmem [thread:$0]  %s4569_s4, 16, %s59_s16, [#allocation11]  }
  0x46   :  { %s3700_s23 = scalar_lea.vmem %s82_s17, 512  ;;  %p3705_p3 = scmp.lt.s32.totalorder %s82_s17, %s82_s17 }
  0x47   :  { %p3701_p2 = scmp.ne.s32.totalorder %s82_s17, %s3700_s23  ;;  %p3706_p4 = scmp.lt.s32.totalorder %s3700_s23, %s3700_s23 }
  0x49   :  { %p3707_p5 = por %p3706_p4, %p3705_p3 }
  0x4b   :  { %p3708_p6 = pnand %p3707_p5, %p3701_p2 }
  0x4d   :  { %3711 = shalt.err (!%p3708_p6)
}
  0x4e   :  { %87 = dma.hbm_to_vmem [thread:$0]  %s4572_s7, 512, %s82_s17, [#allocation14], %s3785_s21, %s3785_s21, %s3786_s22  }
  0x4f   :  { %s3793_s25 = smov [#allocation18]   ;;  %s3794_s6 = smov [#allocation21]  }
  0x50   :  { %s104_s27 = sshll.u32 %s3793_s25, 4  ;;  %s130_s4 = sshll.u32 %s3794_s6, 4  ;;  %s105_s27 = int_to_ptr.vmem [resolvable:$true] %s104_s27  ;;  %s131_s4 = int_to_ptr.vmem [resolvable:$true] %s130_s4 }
  0x51   :  { %s3720_s26 = scalar_lea.vmem %s105_s27, 16  ;;  %s3724_s8 = scalar_lea.vmem %s105_s27, 32 }
  0x52   :  { %p3721_p7 = scmp.ne.s32.totalorder %s105_s27, %s3720_s26  ;;  %p3725_p8 = scmp.lt.s32.totalorder %s105_s27, %s105_s27 }
  0x53   :  { %p3726_p9 = scmp.lt.s32.totalorder %s3724_s8, %s3720_s26 }
  0x55   :  { %p3727_p10 = por %p3726_p9, %p3725_p8 }
  0x57   :  { %p3728_p11 = pnand %p3727_p10, %p3721_p7 }
  0x59   :  { %3731 = shalt.err (!%p3728_p11)
}
  0x5a   :  { %107 = dma.hbm_to_vmem [thread:$0]  %s4574_s9, 16, %s105_s27, [#allocation17]  }
  0x5b   :  { %s3740_s30 = scalar_lea.vmem %s131_s4, 16  ;;  %s3744_s7 = scalar_lea.vmem %s131_s4, 32 }
  0x5c   :  { %p3741_p12 = scmp.ne.s32.totalorder %s131_s4, %s3740_s30  ;;  %p3745_p13 = scmp.lt.s32.totalorder %s131_s4, %s131_s4 }
  0x5d   :  { %p3746_p0 = scmp.lt.s32.totalorder %s3744_s7, %s3740_s30 }
  0x5f   :  { %p3747_p1 = por %p3746_p0, %p3745_p13 }
  0x61   :  { %p3748_p2 = pnand %p3747_p1, %p3741_p12 }
  0x63   :  { %3751 = shalt.err (!%p3748_p2)
}
  0x64   :  { %133 = dma.hbm_to_vmem [thread:$0]  %s4578_s13, 16, %s131_s4, [#allocation20]  }
  0x65   :  { %3772 = dma.done.wait [#allocation8], 128  }
  0x66   :  { %3773 = vsyncadd [#allocation8], 4294967168 }
  0x67   :  { %3774 = dma.done.wait [#allocation11], 1040  }
  0x68   :  { %3775 = vsyncadd [#allocation11], 4294966256 }
  0x69   :  { %3776 = dma.done.wait [#allocation14], 1024  }
  0x6a   :  { %3777 = vsyncadd [#allocation14], 4294966272 }
  0x6b   :  { %3778 = dma.done.wait [#allocation17], 32  }
  0x6c   :  { %3779 = vsyncadd [#allocation17], 4294967264 }
  0x6d   :  { %3780 = dma.done.wait [#allocation20], 272  }
  0x6e   :  { %3781 = vsyncadd [#allocation20], 4294967024  ;;  %v3795_v0 = vmov 0.0   ;;  %vm3796_vm0 = vmmov 0   ;;  %v178_v1 = vld [vmem:[#allocation10 + $0x38] sm:$0xff]  ;;  %v177_v2 = vld [vmem:[#allocation10 + $0x30] sm:$0xff] }
  0x6f   :  { %3123 = vmatprep.subr.mxu1 %v3795_v0  ;;  %3131 = vmatprep.mubr.msk.f32.mxu1 %vm3796_vm0, %v3795_v0  ;;  %vm186_vm1 = vcmask 523264   ;;  %v176_v3 = vld [vmem:[#allocation10 + $0x28] sm:$0xff]  ;;  %v163_v4 = vld [vmem:[%s4565_s0] sm:$0xff]  ;;  %v3931_v5 = vld [vmem:[%s4570_s5 + $0x18] sm:$0xff]  ;;  %vm316_vm2 = vcmask 261120   ;;  %s3797_s25 = smov 96  }
  0x70   :  { %3095 = vmatprep.subr.mxu0 %v178_v1  ;;  %3111 = vmatprep.mubr.msk.f32.mxu0 %vm186_vm1, %v163_v4  ;;  %v3936_v6 = vld [vmem:[%s4570_s5 + $0x10] sm:$0xff]  ;;  %v175_v7 = vld [vmem:[#allocation10 + $0x20] sm:$0xff]  ;;  %v174_v9 = vld [vmem:[#allocation10 + $0x18] sm:$0xff]  ;;  %s3798_s27 = smov 64   ;;  %s3799_s16 = smov 112   ;;  %vm2424_vm3 = vcmask 130048  }
  0x71   :  { %3096 = vmatpush3.msra.mxu0 %v178_v1  ;;  %3124 = vmatpush3.msra.mxu1 %v3931_v5  ;;  %v3943_v8 = vld [vmem:[%s4570_s5 + $0x8] sm:$0xff]  ;;  %v3950_v10 = vld [vmem:[%s4570_s5] sm:$0xff]  ;;  %v173_v11 = vld [vmem:[#allocation10 + $0x10] sm:$0xff] }
  0x72   :  { %3097 = vmatprep.subr.mxu0 %v177_v2  ;;  %3125 = vmatprep.subr.mxu1 %v3795_v0  ;;  %v3953_v12 = vld [vmem:[#allocation7] sm:$0xff]  ;;  %v172_v13 = vld [vmem:[#allocation10 + $0x8] sm:$0xff]  ;;  %v171_v15 = vld [vmem:[#allocation10] sm:$0xff] }
  0x73   :  { %3098 = vmatpush3.msra.mxu0 %v177_v2  ;;  %3126 = vmatpush3.msra.mxu1 %v3936_v6  ;;  %v3957_v14 = vld [vmem:[#allocation13 + $0x18] sm:$0xff]  ;;  %v3962_v16 = vld [vmem:[#allocation13 + $0x10] sm:$0xff]  ;;  %v3969_v18 = vld [vmem:[#allocation13 + $0x8] sm:$0xff] }
  0x74   :  { %3099 = vmatprep.subr.mxu0 %v176_v3  ;;  %3127 = vmatprep.subr.mxu1 %v3795_v0  ;;  %v164_v17 = vld [vmem:[%s4565_s0 + $0x8] sm:$0xff]  ;;  %v3987_v21 = vld [vmem:[#allocation15 + $0x10] sm:$0xff]  ;;  %v3993_v22 = vld [vmem:[#allocation15 + $0x8] sm:$0xff] }
  0x75   :  { %3100 = vmatpush3.msra.mxu0 %v176_v3  ;;  %3128 = vmatpush3.msra.mxu1 %v3943_v8  ;;  %v3973_v19 = vld [vmem:[#allocation13] sm:$0xff]  ;;  %v3980_v20 = vld [vmem:[#allocation15 + $0x18] sm:$0xff]  ;;  %v166_v41 = vld [vmem:[%s4565_s0 + $0x18] sm:$0xff] }
  0x76   :  { %3101 = vmatprep.subr.mxu0 %v175_v7  ;;  %3129 = vmatprep.subr.mxu1 %v3795_v0  ;;  %v3999_v23 = vld [vmem:[#allocation15] sm:$0xff]  ;;  %v4023_v26 = vld [vmem:[#allocation12] ss:$0 sm:$0xff]  ;;  %v167_v42 = vld [vmem:[%s4565_s0 + $0x20] sm:$0xff] }
  0x77   :  { %3102 = vmatpush3.msra.mxu0 %v175_v7  ;;  %3130 = vmatpush3.msra.mxu1 %v3950_v10  ;;  %v4031_v33 = vld [vmem:[#allocation16] ss:$0 sm:$0xff]  ;;  %v165_v40 = vld [vmem:[%s4565_s0 + $0x10] sm:$0xff]  ;;  %v170_v45 = vld [vmem:[%s4565_s0 + $0x38] sm:$0xff] }
  0x78   :  { %3103 = vmatprep.subr.mxu0 %v174_v9  ;;  %3132 = vmatmul.mubr.msk.f32.vlgmr.msra.gmra.mxu1 %vm316_vm2, %v3953_v12  ;;  %v168_v43 = vld [vmem:[%s4565_s0 + $0x28] sm:$0xff]  ;;  %v169_v44 = vld [vmem:[%s4565_s0 + $0x30] sm:$0xff]  ;;  %v4065_v48 = vld [vmem:[%s4575_s10] ss:$0 sm:$0xff] }
  0x79   :  { %3104 = vmatpush3.msra.mxu0 %v174_v9  ;;  %3134 = vmatprep.subr.mxu1 %v3795_v0  ;;  %v4070_v54 = vld [vmem:[#allocation18] ss:$0 sm:$0xff]  ;;  %v413_v2 = vld [vmem:[%s4566_s1] sm:$0xff] }
  0x7a   :  { %3105 = vmatprep.subr.mxu0 %v173_v11  ;;  %3135 = vmatpush3.msra.mxu1 %v3957_v14  ;;  %v672_v4 = vsub.f32 1.0, %v413_v2 }
  0x7b   :  { %3106 = vmatpush3.msra.mxu0 %v173_v11  ;;  %3136 = vmatprep.subr.mxu1 %v3795_v0 }
  0x7c   :  { %3107 = vmatprep.subr.mxu0 %v172_v13  ;;  %3137 = vmatpush3.msra.mxu1 %v3962_v16 }
  0x7d   :  { %3108 = vmatpush3.msra.mxu0 %v172_v13  ;;  %3138 = vmatprep.subr.mxu1 %v3795_v0 }
  0x7e   :  { %3109 = vmatprep.subr.mxu0 %v171_v15  ;;  %3139 = vmatpush3.msra.mxu1 %v3969_v18 }
  0x7f   :  { %3110 = vmatpush3.msra.mxu0 %v171_v15  ;;  %3140 = vmatprep.subr.mxu1 %v3795_v0  ;;  %v673_v15 = vmul.f32 %v672_v4, %v3953_v12 }
  0x80   :  { %3112 = vmatmul.mubr.msk.f32.vlgmr.msra.gmra.mxu0 %vm186_vm1, %v164_v17  ;;  %3142 = vmatprep.mubr.msk.f32.mxu1 %vm3796_vm0, %v3795_v0 }
  0x81   :  { %3141 = vmatpush3.msra.mxu1 %v3973_v19  ;;  %3156 = vmatprep.subr.mxu0 %v3795_v0 }
  0x82   :  { %3145 = vmatprep.subr.mxu1 %v3795_v0  ;;  %3143 = vmatmul.mubr.msk.f32.vlgmr.msra.gmra.mxu1 %vm316_vm2, %v3953_v12 }
  0x83   :  { %3146 = vmatpush3.msra.mxu1 %v3980_v20  ;;  %3153 = vmatprep.mubr.msk.f32.mxu1 %vm3796_vm0, %v3795_v0 }
  0x84   :  { %3147 = vmatprep.subr.mxu1 %v3795_v0  ;;  %3157 = vmatpush3.msra.mxu0 %v3931_v5 }
  0x85   :  { %3148 = vmatpush3.msra.mxu1 %v3987_v21  ;;  %3158 = vmatprep.subr.mxu0 %v3795_v0 }
  0x86   :  { %3149 = vmatprep.subr.mxu1 %v3795_v0  ;;  %3159 = vmatpush3.msra.mxu0 %v3936_v6 }
  0x87   :  { %3150 = vmatpush3.msra.mxu1 %v3993_v22  ;;  %3160 = vmatprep.subr.mxu0 %v3795_v0 }
  0x88   :  { %3151 = vmatprep.subr.mxu1 %v3795_v0  ;;  %3161 = vmatpush3.msra.mxu0 %v3943_v8 }
  0x89   :  { %3152 = vmatpush3.msra.mxu1 %v3999_v23  ;;  %3162 = vmatprep.subr.mxu0 %v3795_v0 }
  0x8a   :  { %3154 = vmatmul.mubr.msk.f32.vlgmr.msra.gmra.mxu1 %vm316_vm2, %v3953_v12  ;;  %3167 = vmatprep.subr.mxu1 %v3795_v0 }
  0x8b   :  { %3168 = vmatpush3.msra.mxu1 %v3957_v14  ;;  %3163 = vmatpush3.msra.mxu0 %v3950_v10 }
  0x8c   :  { %3169 = vmatprep.subr.mxu1 %v3795_v0  ;;  %3175 = vmatprep.mubr.msk.f32.mxu1 %vm3796_vm0, %v3795_v0 }
  0x8d   :  { %3170 = vmatpush3.msra.mxu1 %v3962_v16  ;;  %3178 = vmatprep.subr.mxu0 %v3795_v0 }
  0x8e   :  { %3171 = vmatprep.subr.mxu1 %v3795_v0  ;;  %3114 = vmatprep.mubr.msk.f32.mxu0 %vm186_vm1, %v165_v40 }
  0x8f   :  { %3172 = vmatpush3.msra.mxu1 %v3969_v18  ;;  %3115 = vmatmul.mubr.msk.f32.gmra.mxu0 %vm186_vm1, %v166_v41 }
  0x90   :  { %3173 = vmatprep.subr.mxu1 %v3795_v0  ;;  %3117 = vmatprep.mubr.msk.f32.mxu0 %vm186_vm1, %v167_v42 }
  0x91   :  { %3174 = vmatpush3.msra.mxu1 %v3973_v19 }
  0x92   :  { %3189 = vmatprep.subr.mxu1 %v3795_v0 }
  0x93   :  { %3118 = vmatmul.mubr.msk.f32.gmra.mxu0 %vm186_vm1, %v168_v43 }
  0x94   :  { %3120 = vmatprep.mubr.msk.f32.mxu0 %vm186_vm1, %v169_v44 }
  0x97   :  { %3121 = vmatmul.mubr.msk.f32.gmra.mxu0 %vm186_vm1, %v170_v45 }
  0x98   :  { %3164 = vmatprep.mubr.msk.f32.mxu0 %vm3796_vm0, %v3795_v0 }
 0x138   :  { %v489_v24 = vpop.f32.mrf.mxu1 }
 0x139   :  { %v490_v34 = vadd.f32 %v4031_v33, %v489_v24 }
 0x13a   :  { %v3133_v25 = vpop.f32.mrf.mxu1 }
 0x140   :  { %v3113_v27 = vpop.f32.mrf.mxu0 }
 0x141   :  { %v283_v28 = vadd.f32 %v3113_v27, %v4023_v26 }
 0x142   :  { %v277_v29 = vpop.f32.mrf.mxu0  ;;  %v565_v31 = vpop.f32.mrf.mxu1 }
 0x143   :  { %318 = vst.msk [vmem:[#allocation2 + $0x8] sm:$0xff] %vm316_vm2, %v283_v28  ;;  %v278_v30 = vadd.f32 %v4023_v26, %v277_v29  ;;  %335 = vrot.lane.b32.xlu1 %v283_v28, %s3797_s25  ;;  %v566_v57 = vadd.f32 %v4070_v54, %v565_v31 }
 0x144   :  { %v3144_v32 = vpop.f32.mrf.mxu1 }
 0x145   :  { %317 = vst.msk [vmem:[#allocation2] sm:$0xff] %vm316_vm2, %v278_v30  ;;  %333 = vrot.lane.b32.xlu0 %v278_v30, %s3797_s25 }
 0x147   :  { %367 = vrot.lane.b32.xlu1 %v283_v28, %s3798_s27 }
 0x149   :  { %365 = vrot.lane.b32.xlu0 %v278_v30, %s3798_s27 }
 0x14a   :  { %v641_v35 = vpop.f32.mrf.mxu1 }
 0x14b   :  { %v642_v49 = vadd.f32 %v4065_v48, %v641_v35 }
 0x14c   :  { %v645_v36 = vld [vmem:[#allocation2] sm:$0xff]  ;;  %v3155_v38 = vpop.f32.mrf.mxu1 }
 0x14d   :  { %v646_v37 = vadd.f32 %v645_v36, %v490_v34 }
 0x14f   :  { %v2885_v39 = vmul.f32 -1.442695, %v646_v37 }
 0x151   :  { %3443 = vpow2.f32 %v2885_v39 }
 0x15e   :  { %v3444_v46 = vpop.eup %3443 }
 0x15f   :  { %v650_v47 = vadd.f32 1.0, %v3444_v46 }
 0x161   :  { %3445 = vrcp.f32 %v650_v47 }
 0x16e   :  { %v3446_v50 = vpop.eup %3445 }
 0x16f   :  { %v662_v51 = vmul.f32 %v3446_v50, %v642_v49 }
 0x1b5   :  { %v336_v52 = vpop.permute.xlu1 %335 }
 0x1b6   :  { %358 = vst.msk [vmem:[#allocation3 + $0x8] sm:$0xff] %vm316_vm2, %v336_v52 }
 0x1b7   :  { %v334_v53 = vpop.permute.xlu0 %333 }
 0x1b8   :  { %357 = vst.msk [vmem:[#allocation3] sm:$0xff] %vm316_vm2, %v334_v53 }
 0x1b9   :  { %v368_v55 = vpop.permute.xlu1 %367 }
 0x1ba   :  { %390 = vst.msk [vmem:[#allocation4 + $0x8] sm:$0xff] %vm316_vm2, %v368_v55  ;;  %v889_v55 = vld [vmem:[#allocation2 + $0x8] sm:$0xff] }
 0x1bb   :  { %v366_v56 = vpop.permute.xlu0 %365 }
 0x1bc   :  { %389 = vst.msk [vmem:[#allocation4] sm:$0xff] %vm316_vm2, %v366_v56 }
 0x1bf   :  { %v653_v58 = vld [vmem:[#allocation3] sm:$0xff] }
 0x1c0   :  { %v654_v59 = vadd.f32 %v653_v58, %v566_v57 }
 0x1c2   :  { %v2886_v60 = vmul.f32 -1.442695, %v654_v59 }
 0x1c3   :  { %v661_v61 = vld [vmem:[#allocation4] sm:$0xff] }
 0x1c4   :  { %3447 = vpow2.f32 %v2886_v60  ;;  %v663_v1 = vadd.f32 %v662_v51, %v661_v61  ;;  %v897_v61 = vld [vmem:[#allocation3 + $0x8] sm:$0xff] }
 0x1d1   :  { %v3448_v62 = vpop.eup %3447 }
 0x1d2   :  { %v658_v63 = vadd.f32 1.0, %v3448_v62 }
 0x1d4   :  { %3449 = vrcp.f32 %v658_v63 }
 0x1d5   :  { %3451 = vtanh.f32 %v663_v1 }
 0x1e1   :  { %v3450_v3 = vpop.eup %3449 }
 0x1e2   :  { %v665_v7 = vsub.f32 1.0, %v3450_v3  ;;  %v3452_v9 = vpop.eup %3451  ;;  %v667_v13 = vmul.f32 %v3450_v3, %v3953_v12  ;;  %v3116_v12 = vpop.f32.mrf.mxu0 }
 0x1e3   :  { %v293_v27 = vadd.f32 %v3116_v12, %v4023_v26 }
 0x1e4   :  { %v666_v11 = vmul.f32 %v3452_v9, %v665_v7  ;;  %v287_v28 = vpop.f32.mrf.mxu0 }
 0x1e5   :  { %320 = vst.msk [vmem:[#allocation2 + $0x18] sm:$0xff] %vm316_vm2, %v293_v27  ;;  %v288_v29 = vadd.f32 %v4023_v26, %v287_v28 }
 0x1e6   :  { %v668_v17 = vadd.f32 %v667_v13, %v666_v11  ;;  %v3119_v30 = vpop.f32.mrf.mxu0 }
 0x1e7   :  { %319 = vst.msk [vmem:[#allocation2 + $0x10] sm:$0xff] %vm316_vm2, %v288_v29  ;;  %369 = vrot.lane.b32.xlu1 %v288_v29, %s3798_s27  ;;  %337 = vrot.lane.b32.xlu0 %v288_v29, %s3797_s25  ;;  %v303_v31 = vadd.f32 %v3119_v30, %v4023_v26 }
 0x1e8   :  { %v669_v24 = vmul.f32 %v668_v17, %v413_v2  ;;  %v297_v32 = vpop.f32.mrf.mxu0  ;;  %v905_v17 = vld [vmem:[#allocation4 + $0x8] sm:$0xff] }
 0x1e9   :  { %322 = vst.msk [vmem:[#allocation2 + $0x28] sm:$0xff] %vm316_vm2, %v303_v31  ;;  %v298_v34 = vadd.f32 %v4023_v26, %v297_v32 }
 0x1ea   :  { %670 = vst.msk [vmem:[#allocation5] sm:$0xff] %vm316_vm2, %v669_v24  ;;  %671 = vst.msk [vmem:[#allocation6 + $0x38] sm:$0xff] %vm316_vm2, %v669_v24  ;;  %v4082_v25 = vadd.f32 %v673_v15, %v669_v24  ;;  %v3122_v35 = vpop.f32.mrf.mxu0 }
 0x1eb   :  { %371 = vrot.lane.b32.xlu1 %v293_v27, %s3798_s27  ;;  %339 = vrot.lane.b32.xlu0 %v293_v27, %s3797_s25  ;;  %321 = vst.msk [vmem:[#allocation2 + $0x20] sm:$0xff] %vm316_vm2, %v298_v34  ;;  %v313_v36 = vadd.f32 %v3122_v35, %v4023_v26  ;;  %v4162_v27 = vld [vmem:[%s4566_s1 + $0x8] sm:$0xff] }
 0x1ec   :  { %3165 = vmatmul.mubr.msk.f32.vlgmr.msra.gmra.mxu0 %vm316_vm2, %v4082_v25  ;;  %3176 = vmatmul.mubr.msk.f32.vlgmr.msra.gmra.mxu1 %vm316_vm2, %v4082_v25  ;;  %v307_v37 = vpop.f32.mrf.mxu0  ;;  %v916_v32 = vsub.f32 1.0, %v4162_v27 }
 0x1ed   :  { %3179 = vmatpush3.msra.mxu0 %v3980_v20  ;;  %3186 = vmatprep.mubr.msk.f32.mxu0 %vm3796_vm0, %v3795_v0  ;;  %324 = vst.msk [vmem:[#allocation2 + $0x38] sm:$0xff] %vm316_vm2, %v313_v36  ;;  %v308_v38 = vadd.f32 %v4023_v26, %v307_v37 }
 0x1ee   :  { %3180 = vmatprep.subr.mxu0 %v3795_v0  ;;  %3190 = vmatpush3.msra.mxu1 %v3931_v5 }
 0x1ef   :  { %3181 = vmatpush3.msra.mxu0 %v3987_v21  ;;  %3191 = vmatprep.subr.mxu1 %v3795_v0  ;;  %323 = vst.msk [vmem:[#allocation2 + $0x30] sm:$0xff] %vm316_vm2, %v308_v38 }
 0x1f0   :  { %3182 = vmatprep.subr.mxu0 %v3795_v0  ;;  %3192 = vmatpush3.msra.mxu1 %v3936_v6 }
 0x1f1   :  { %3183 = vmatpush3.msra.mxu0 %v3993_v22  ;;  %3193 = vmatprep.subr.mxu1 %v3795_v0 }
 0x1f2   :  { %3184 = vmatprep.subr.mxu0 %v3795_v0  ;;  %3194 = vmatpush3.msra.mxu1 %v3943_v8 }
 0x1f3   :  { %3185 = vmatpush3.msra.mxu0 %v3999_v23  ;;  %3195 = vmatprep.subr.mxu1 %v3795_v0 }
 0x1f4   :  { %3187 = vmatmul.mubr.msk.f32.vlgmr.msra.gmra.mxu0 %vm316_vm2, %v4082_v25  ;;  %3200 = vmatprep.subr.mxu0 %v3795_v0 }
 0x1f5   :  { %3201 = vmatpush3.msra.mxu0 %v3957_v14  ;;  %3196 = vmatpush3.msra.mxu1 %v3950_v10 }
 0x1f6   :  { %3202 = vmatprep.subr.mxu0 %v3795_v0  ;;  %3197 = vmatprep.mubr.msk.f32.mxu1 %vm3796_vm0, %v3795_v0 }
 0x1f7   :  { %3203 = vmatpush3.msra.mxu0 %v3962_v16  ;;  %3208 = vmatprep.mubr.msk.f32.mxu0 %vm3796_vm0, %v3795_v0 }
 0x1f8   :  { %3204 = vmatprep.subr.mxu0 %v3795_v0  ;;  %3211 = vmatprep.subr.mxu1 %v3795_v0 }
 0x1f9   :  { %3205 = vmatpush3.msra.mxu0 %v3969_v18  ;;  %373 = vrot.lane.b32.xlu1 %v298_v34, %s3798_s27 }
 0x1fa   :  { %3206 = vmatprep.subr.mxu0 %v3795_v0  ;;  %341 = vrot.lane.b32.xlu0 %v298_v34, %s3797_s25 }
 0x1fb   :  { %3207 = vmatpush3.msra.mxu0 %v3973_v19 }
 0x1fc   :  { %3222 = vmatprep.subr.mxu0 %v3795_v0 }
 0x1fd   :  { %375 = vrot.lane.b32.xlu1 %v303_v31, %s3798_s27 }
 0x1fe   :  { %343 = vrot.lane.b32.xlu0 %v303_v31, %s3797_s25 }
 0x201   :  { %377 = vrot.lane.b32.xlu1 %v308_v38, %s3798_s27 }
 0x202   :  { %345 = vrot.lane.b32.xlu0 %v308_v38, %s3797_s25 }
 0x205   :  { %379 = vrot.lane.b32.xlu1 %v313_v36, %s3798_s27 }
 0x206   :  { %347 = vrot.lane.b32.xlu0 %v313_v36, %s3797_s25  ;;  %v917_v36 = vmul.f32 %v916_v32, %v4082_v25 }
 0x259   :  { %v370_v39 = vpop.permute.xlu1 %369  ;;  %v338_v26 = vpop.permute.xlu0 %337 }
 0x25a   :  { %391 = vst.msk [vmem:[#allocation4 + $0x10] sm:$0xff] %vm316_vm2, %v370_v39  ;;  %359 = vst.msk [vmem:[#allocation3 + $0x10] sm:$0xff] %vm316_vm2, %v338_v26  ;;  %v1133_v26 = vld [vmem:[#allocation2 + $0x10] sm:$0xff] }
 0x25d   :  { %v372_v40 = vpop.permute.xlu1 %371  ;;  %v340_v41 = vpop.permute.xlu0 %339 }
 0x25e   :  { %392 = vst.msk [vmem:[#allocation4 + $0x18] sm:$0xff] %vm316_vm2, %v372_v40  ;;  %360 = vst.msk [vmem:[#allocation3 + $0x18] sm:$0xff] %vm316_vm2, %v340_v41 }
 0x26b   :  { %v374_v42 = vpop.permute.xlu1 %373 }
 0x26c   :  { %v342_v43 = vpop.permute.xlu0 %341  ;;  %393 = vst.msk [vmem:[#allocation4 + $0x20] sm:$0xff] %vm316_vm2, %v374_v42 }
 0x26d   :  { %361 = vst.msk [vmem:[#allocation3 + $0x20] sm:$0xff] %vm316_vm2, %v342_v43 }
 0x26f   :  { %v376_v44 = vpop.permute.xlu1 %375 }
 0x270   :  { %v344_v45 = vpop.permute.xlu0 %343  ;;  %394 = vst.msk [vmem:[#allocation4 + $0x28] sm:$0xff] %vm316_vm2, %v376_v44 }
 0x271   :  { %362 = vst.msk [vmem:[#allocation3 + $0x28] sm:$0xff] %vm316_vm2, %v344_v45  ;;  %v1141_v45 = vld [vmem:[#allocation3 + $0x10] sm:$0xff] }
 0x273   :  { %v378_v46 = vpop.permute.xlu1 %377 }
 0x274   :  { %v346_v47 = vpop.permute.xlu0 %345  ;;  %395 = vst.msk [vmem:[#allocation4 + $0x30] sm:$0xff] %vm316_vm2, %v378_v46 }
 0x275   :  { %363 = vst.msk [vmem:[#allocation3 + $0x30] sm:$0xff] %vm316_vm2, %v346_v47 }
 0x277   :  { %v380_v49 = vpop.permute.xlu1 %379 }
 0x278   :  { %v348_v50 = vpop.permute.xlu0 %347  ;;  %396 = vst.msk [vmem:[#allocation4 + $0x38] sm:$0xff] %vm316_vm2, %v380_v49 }
 0x279   :  { %364 = vst.msk [vmem:[#allocation3 + $0x38] sm:$0xff] %vm316_vm2, %v348_v50 }
 0x2ac   :  { %v745_v51 = vpop.f32.mrf.mxu0  ;;  %v815_v52 = vpop.f32.mrf.mxu1 }
 0x2ad   :  { %v746_v53 = vadd.f32 %v4031_v33, %v745_v51  ;;  %v816_v60 = vadd.f32 %v4070_v54, %v815_v52 }
 0x2ae   :  { %v3166_v56 = vpop.f32.mrf.mxu0  ;;  %v3177_v57 = vpop.f32.mrf.mxu1 }
 0x2af   :  { %v890_v58 = vadd.f32 %v889_v55, %v746_v53  ;;  %v898_v63 = vadd.f32 %v897_v61, %v816_v60 }
 0x2b1   :  { %v2890_v59 = vmul.f32 -1.442695, %v890_v58  ;;  %v2891_v2 = vmul.f32 -1.442695, %v898_v63 }
 0x2b3   :  { %3453 = vpow2.f32 %v2890_v59  ;;  %v1149_v59 = vld [vmem:[#allocation4 + $0x10] sm:$0xff] }
 0x2b4   :  { %v885_v62 = vpop.f32.mrf.mxu0  ;;  %3455 = vpow2.f32 %v2891_v2 }
 0x2b5   :  { %v886_v11 = vadd.f32 %v4065_v48, %v885_v62  ;;  %v4214_v62 = vld [vmem:[%s4566_s1 + $0x10] sm:$0xff] }
 0x2b6   :  { %v3188_v1 = vpop.f32.mrf.mxu0 }
 0x2c0   :  { %v3454_v3 = vpop.eup %3453 }
 0x2c1   :  { %v894_v4 = vadd.f32 1.0, %v3454_v3  ;;  %v3456_v7 = vpop.eup %3455 }
 0x2c2   :  { %v902_v9 = vadd.f32 1.0, %v3456_v7 }
 0x2c3   :  { %3457 = vrcp.f32 %v894_v4  ;;  %v1160_v4 = vsub.f32 1.0, %v4214_v62 }
 0x2c4   :  { %3459 = vrcp.f32 %v902_v9 }
 0x2d0   :  { %v3458_v13 = vpop.eup %3457 }
 0x2d1   :  { %v906_v15 = vmul.f32 %v3458_v13, %v886_v11  ;;  %v3460_v12 = vpop.eup %3459 }
 0x2d2   :  { %v909_v28 = vsub.f32 1.0, %v3460_v12  ;;  %v911_v31 = vmul.f32 %v3460_v12, %v4082_v25  ;;  %v1377_v12 = vld [vmem:[#allocation2 + $0x18] sm:$0xff] }
 0x2d3   :  { %v907_v24 = vadd.f32 %v906_v15, %v905_v17 }
 0x2d5   :  { %3461 = vtanh.f32 %v907_v24 }
 0x2e2   :  { %v3462_v29 = vpop.eup %3461 }
 0x2e3   :  { %v910_v30 = vmul.f32 %v3462_v29, %v909_v28 }
 0x2e5   :  { %v912_v34 = vadd.f32 %v911_v31, %v910_v30 }
 0x2e7   :  { %v913_v35 = vmul.f32 %v912_v34, %v4162_v27  ;;  %v1385_v34 = vld [vmem:[#allocation3 + $0x18] sm:$0xff] }
 0x2e9   :  { %914 = vst.msk [vmem:[#allocation5 + $0x8] sm:$0xff] %vm316_vm2, %v913_v35  ;;  %915 = vst.msk [vmem:[#allocation6 + $0x30] sm:$0xff] %vm316_vm2, %v913_v35  ;;  %v4170_v37 = vadd.f32 %v917_v36, %v913_v35 }
 0x2eb   :  { %3198 = vmatmul.mubr.msk.f32.vlgmr.msra.gmra.mxu1 %vm316_vm2, %v4170_v37  ;;  %3209 = vmatmul.mubr.msk.f32.vlgmr.msra.gmra.mxu0 %vm316_vm2, %v4170_v37  ;;  %v1161_v11 = vmul.f32 %v1160_v4, %v4170_v37 }
 0x2ec   :  { %3212 = vmatpush3.msra.mxu1 %v3980_v20  ;;  %3219 = vmatprep.mubr.msk.f32.mxu1 %vm3796_vm0, %v3795_v0 }
 0x2ed   :  { %3213 = vmatprep.subr.mxu1 %v3795_v0  ;;  %3223 = vmatpush3.msra.mxu0 %v3931_v5 }
 0x2ee   :  { %3214 = vmatpush3.msra.mxu1 %v3987_v21  ;;  %3224 = vmatprep.subr.mxu0 %v3795_v0 }
 0x2ef   :  { %3215 = vmatprep.subr.mxu1 %v3795_v0  ;;  %3225 = vmatpush3.msra.mxu0 %v3936_v6 }
 0x2f0   :  { %3216 = vmatpush3.msra.mxu1 %v3993_v22  ;;  %3226 = vmatprep.subr.mxu0 %v3795_v0 }
 0x2f1   :  { %3217 = vmatprep.subr.mxu1 %v3795_v0  ;;  %3227 = vmatpush3.msra.mxu0 %v3943_v8 }
 0x2f2   :  { %3218 = vmatpush3.msra.mxu1 %v3999_v23  ;;  %3228 = vmatprep.subr.mxu0 %v3795_v0 }
 0x2f3   :  { %3220 = vmatmul.mubr.msk.f32.vlgmr.msra.gmra.mxu1 %vm316_vm2, %v4170_v37  ;;  %3233 = vmatprep.subr.mxu1 %v3795_v0 }
 0x2f4   :  { %3234 = vmatpush3.msra.mxu1 %v3957_v14  ;;  %3229 = vmatpush3.msra.mxu0 %v3950_v10 }
 0x2f5   :  { %3235 = vmatprep.subr.mxu1 %v3795_v0  ;;  %3230 = vmatprep.mubr.msk.f32.mxu0 %vm3796_vm0, %v3795_v0 }
 0x2f6   :  { %3236 = vmatpush3.msra.mxu1 %v3962_v16  ;;  %3241 = vmatprep.mubr.msk.f32.mxu1 %vm3796_vm0, %v3795_v0 }
 0x2f7   :  { %3237 = vmatprep.subr.mxu1 %v3795_v0  ;;  %3244 = vmatprep.subr.mxu0 %v3795_v0 }
 0x2f8   :  { %3238 = vmatpush3.msra.mxu1 %v3969_v18 }
 0x2f9   :  { %3239 = vmatprep.subr.mxu1 %v3795_v0 }
 0x2fa   :  { %3240 = vmatpush3.msra.mxu1 %v3973_v19 }
 0x2fb   :  { %3255 = vmatprep.subr.mxu1 %v3795_v0 }
 0x3ab   :  { %v989_v25 = vpop.f32.mrf.mxu1  ;;  %v1059_v38 = vpop.f32.mrf.mxu0 }
 0x3ac   :  { %v990_v39 = vadd.f32 %v4031_v33, %v989_v25  ;;  %v1060_v44 = vadd.f32 %v4070_v54, %v1059_v38 }
 0x3ad   :  { %v3199_v40 = vpop.f32.mrf.mxu1  ;;  %v3210_v41 = vpop.f32.mrf.mxu0 }
 0x3ae   :  { %v1134_v42 = vadd.f32 %v1133_v26, %v990_v39  ;;  %v1142_v47 = vadd.f32 %v1141_v45, %v1060_v44  ;;  %v1393_v44 = vld [vmem:[#allocation4 + $0x18] sm:$0xff] }
 0x3b0   :  { %v2895_v43 = vmul.f32 -1.442695, %v1134_v42  ;;  %v2896_v50 = vmul.f32 -1.442695, %v1142_v47  ;;  %v4266_v47 = vld [vmem:[%s4566_s1 + $0x18] sm:$0xff] }
 0x3b2   :  { %3463 = vpow2.f32 %v2895_v43 }
 0x3b3   :  { %v1129_v46 = vpop.f32.mrf.mxu1  ;;  %3465 = vpow2.f32 %v2896_v50 }
 0x3b4   :  { %v1130_v56 = vadd.f32 %v4065_v48, %v1129_v46 }
 0x3b5   :  { %v3221_v49 = vpop.f32.mrf.mxu1 }
 0x3bf   :  { %v3464_v51 = vpop.eup %3463 }
 0x3c0   :  { %v1138_v52 = vadd.f32 1.0, %v3464_v51  ;;  %v3466_v53 = vpop.eup %3465 }
 0x3c1   :  { %v1146_v55 = vadd.f32 1.0, %v3466_v53  ;;  %v1404_v53 = vsub.f32 1.0, %v4266_v47 }
 0x3c2   :  { %3467 = vrcp.f32 %v1138_v52 }
 0x3c3   :  { %3469 = vrcp.f32 %v1146_v55 }
 0x3cf   :  { %v3468_v57 = vpop.eup %3467 }
 0x3d0   :  { %v1150_v58 = vmul.f32 %v3468_v57, %v1130_v56  ;;  %v3470_v61 = vpop.eup %3469 }
 0x3d1   :  { %v1153_v63 = vsub.f32 1.0, %v3470_v61  ;;  %v1155_v3 = vmul.f32 %v3470_v61, %v4170_v37 }
 0x3d2   :  { %v1151_v60 = vadd.f32 %v1150_v58, %v1149_v59 }
 0x3d4   :  { %3471 = vtanh.f32 %v1151_v60 }
 0x3e1   :  { %v3472_v1 = vpop.eup %3471 }
 0x3e2   :  { %v1154_v2 = vmul.f32 %v3472_v1, %v1153_v63  ;;  %v1621_v63 = vld [vmem:[#allocation2 + $0x20] sm:$0xff] }
 0x3e4   :  { %v1156_v7 = vadd.f32 %v1155_v3, %v1154_v2 }
 0x3e6   :  { %v1157_v9 = vmul.f32 %v1156_v7, %v4214_v62 }
 0x3e8   :  { %1158 = vst.msk [vmem:[#allocation5 + $0x10] sm:$0xff] %vm316_vm2, %v1157_v9  ;;  %1159 = vst.msk [vmem:[#allocation6 + $0x28] sm:$0xff] %vm316_vm2, %v1157_v9  ;;  %v4222_v13 = vadd.f32 %v1161_v11, %v1157_v9  ;;  %v1629_v9 = vld [vmem:[#allocation3 + $0x20] sm:$0xff] }
 0x3ea   :  { %3231 = vmatmul.mubr.msk.f32.vlgmr.msra.gmra.mxu0 %vm316_vm2, %v4222_v13  ;;  %3242 = vmatmul.mubr.msk.f32.vlgmr.msra.gmra.mxu1 %vm316_vm2, %v4222_v13  ;;  %v1405_v57 = vmul.f32 %v1404_v53, %v4222_v13 }
 0x3eb   :  { %3245 = vmatpush3.msra.mxu0 %v3980_v20  ;;  %3252 = vmatprep.mubr.msk.f32.mxu0 %vm3796_vm0, %v3795_v0 }
 0x3ec   :  { %3246 = vmatprep.subr.mxu0 %v3795_v0  ;;  %3256 = vmatpush3.msra.mxu1 %v3931_v5 }
 0x3ed   :  { %3247 = vmatpush3.msra.mxu0 %v3987_v21  ;;  %3257 = vmatprep.subr.mxu1 %v3795_v0 }
 0x3ee   :  { %3248 = vmatprep.subr.mxu0 %v3795_v0  ;;  %3258 = vmatpush3.msra.mxu1 %v3936_v6 }
 0x3ef   :  { %3249 = vmatpush3.msra.mxu0 %v3993_v22  ;;  %3259 = vmatprep.subr.mxu1 %v3795_v0 }
 0x3f0   :  { %3250 = vmatprep.subr.mxu0 %v3795_v0  ;;  %3260 = vmatpush3.msra.mxu1 %v3943_v8 }
 0x3f1   :  { %3251 = vmatpush3.msra.mxu0 %v3999_v23  ;;  %3261 = vmatprep.subr.mxu1 %v3795_v0 }
 0x3f2   :  { %3253 = vmatmul.mubr.msk.f32.vlgmr.msra.gmra.mxu0 %vm316_vm2, %v4222_v13  ;;  %3266 = vmatprep.subr.mxu0 %v3795_v0 }
 0x3f3   :  { %3267 = vmatpush3.msra.mxu0 %v3957_v14  ;;  %3262 = vmatpush3.msra.mxu1 %v3950_v10 }
 0x3f4   :  { %3268 = vmatprep.subr.mxu0 %v3795_v0  ;;  %3263 = vmatprep.mubr.msk.f32.mxu1 %vm3796_vm0, %v3795_v0 }
 0x3f5   :  { %3269 = vmatpush3.msra.mxu0 %v3962_v16  ;;  %3274 = vmatprep.mubr.msk.f32.mxu0 %vm3796_vm0, %v3795_v0 }
 0x3f6   :  { %3270 = vmatprep.subr.mxu0 %v3795_v0  ;;  %3277 = vmatprep.subr.mxu1 %v3795_v0 }
 0x3f7   :  { %3271 = vmatpush3.msra.mxu0 %v3969_v18 }
 0x3f8   :  { %3272 = vmatprep.subr.mxu0 %v3795_v0 }
 0x3f9   :  { %3273 = vmatpush3.msra.mxu0 %v3973_v19 }
 0x3fa   :  { %3288 = vmatprep.subr.mxu0 %v3795_v0 }
 0x4aa   :  { %v1233_v15 = vpop.f32.mrf.mxu0  ;;  %v1303_v17 = vpop.f32.mrf.mxu1 }
 0x4ab   :  { %v1234_v24 = vadd.f32 %v4031_v33, %v1233_v15  ;;  %v1304_v32 = vadd.f32 %v4070_v54, %v1303_v17 }
 0x4ac   :  { %v3232_v28 = vpop.f32.mrf.mxu0  ;;  %v3243_v29 = vpop.f32.mrf.mxu1 }
 0x4ad   :  { %v1378_v30 = vadd.f32 %v1377_v12, %v1234_v24  ;;  %v1386_v36 = vadd.f32 %v1385_v34, %v1304_v32  ;;  %v1637_v34 = vld [vmem:[#allocation4 + $0x20] sm:$0xff] }
 0x4af   :  { %v2900_v31 = vmul.f32 -1.442695, %v1378_v30  ;;  %v2901_v25 = vmul.f32 -1.442695, %v1386_v36 }
 0x4b1   :  { %3473 = vpow2.f32 %v2900_v31 }
 0x4b2   :  { %v1373_v35 = vpop.f32.mrf.mxu0  ;;  %3475 = vpow2.f32 %v2901_v25 }
 0x4b3   :  { %v1374_v41 = vadd.f32 %v4065_v48, %v1373_v35 }
 0x4b4   :  { %v3254_v37 = vpop.f32.mrf.mxu0 }
 0x4b5   :  { %v4318_v37 = vld [vmem:[%s4566_s1 + $0x20] sm:$0xff] }
 0x4be   :  { %v3474_v38 = vpop.eup %3473 }
 0x4bf   :  { %v1382_v39 = vadd.f32 1.0, %v3474_v38  ;;  %v3476_v26 = vpop.eup %3475 }
 0x4c0   :  { %v1390_v40 = vadd.f32 1.0, %v3476_v26 }
 0x4c1   :  { %3477 = vrcp.f32 %v1382_v39 }
 0x4c2   :  { %3479 = vrcp.f32 %v1390_v40  ;;  %v1648_v40 = vsub.f32 1.0, %v4318_v37 }
 0x4ce   :  { %v3478_v42 = vpop.eup %3477 }
 0x4cf   :  { %v1394_v43 = vmul.f32 %v3478_v42, %v1374_v41  ;;  %v3480_v46 = vpop.eup %3479 }
 0x4d0   :  { %v1397_v49 = vsub.f32 1.0, %v3480_v46  ;;  %v1399_v52 = vmul.f32 %v3480_v46, %v4222_v13 }
 0x4d1   :  { %v1395_v45 = vadd.f32 %v1394_v43, %v1393_v44 }
 0x4d3   :  { %3481 = vtanh.f32 %v1395_v45 }
 0x4e0   :  { %v3482_v50 = vpop.eup %3481 }
 0x4e1   :  { %v1398_v51 = vmul.f32 %v3482_v50, %v1397_v49 }
 0x4e3   :  { %v1400_v55 = vadd.f32 %v1399_v52, %v1398_v51 }
 0x4e5   :  { %v1401_v56 = vmul.f32 %v1400_v55, %v4266_v47 }
 0x4e7   :  { %1402 = vst.msk [vmem:[#allocation5 + $0x18] sm:$0xff] %vm316_vm2, %v1401_v56  ;;  %1403 = vst.msk [vmem:[#allocation6 + $0x20] sm:$0xff] %vm316_vm2, %v1401_v56  ;;  %v4274_v58 = vadd.f32 %v1405_v57, %v1401_v56  ;;  %v1881_v57 = vld [vmem:[#allocation4 + $0x28] sm:$0xff] }
 0x4e9   :  { %3264 = vmatmul.mubr.msk.f32.vlgmr.msra.gmra.mxu1 %vm316_vm2, %v4274_v58  ;;  %3275 = vmatmul.mubr.msk.f32.vlgmr.msra.gmra.mxu0 %vm316_vm2, %v4274_v58  ;;  %v1649_v43 = vmul.f32 %v1648_v40, %v4274_v58 }
 0x4ea   :  { %3278 = vmatpush3.msra.mxu1 %v3980_v20  ;;  %3285 = vmatprep.mubr.msk.f32.mxu1 %vm3796_vm0, %v3795_v0 }
 0x4eb   :  { %3279 = vmatprep.subr.mxu1 %v3795_v0  ;;  %3289 = vmatpush3.msra.mxu0 %v3931_v5 }
 0x4ec   :  { %3280 = vmatpush3.msra.mxu1 %v3987_v21  ;;  %3290 = vmatprep.subr.mxu0 %v3795_v0 }
 0x4ed   :  { %3281 = vmatprep.subr.mxu1 %v3795_v0  ;;  %3291 = vmatpush3.msra.mxu0 %v3936_v6 }
 0x4ee   :  { %3282 = vmatpush3.msra.mxu1 %v3993_v22  ;;  %3292 = vmatprep.subr.mxu0 %v3795_v0 }
 0x4ef   :  { %3283 = vmatprep.subr.mxu1 %v3795_v0  ;;  %3293 = vmatpush3.msra.mxu0 %v3943_v8 }
 0x4f0   :  { %3284 = vmatpush3.msra.mxu1 %v3999_v23  ;;  %3294 = vmatprep.subr.mxu0 %v3795_v0 }
 0x4f1   :  { %3286 = vmatmul.mubr.msk.f32.vlgmr.msra.gmra.mxu1 %vm316_vm2, %v4274_v58  ;;  %3299 = vmatprep.subr.mxu1 %v3795_v0 }
 0x4f2   :  { %3300 = vmatpush3.msra.mxu1 %v3957_v14  ;;  %3295 = vmatpush3.msra.mxu0 %v3950_v10 }
 0x4f3   :  { %3301 = vmatprep.subr.mxu1 %v3795_v0  ;;  %3296 = vmatprep.mubr.msk.f32.mxu0 %vm3796_vm0, %v3795_v0 }
 0x4f4   :  { %3302 = vmatpush3.msra.mxu1 %v3962_v16  ;;  %3307 = vmatprep.mubr.msk.f32.mxu1 %vm3796_vm0, %v3795_v0 }
 0x4f5   :  { %3303 = vmatprep.subr.mxu1 %v3795_v0  ;;  %3310 = vmatprep.subr.mxu0 %v3795_v0 }
 0x4f6   :  { %3304 = vmatpush3.msra.mxu1 %v3969_v18 }
 0x4f7   :  { %3305 = vmatprep.subr.mxu1 %v3795_v0 }
 0x4f8   :  { %3306 = vmatpush3.msra.mxu1 %v3973_v19 }
 0x4f9   :  { %3321 = vmatprep.subr.mxu1 %v3795_v0 }
 0x5a9   :  { %v1477_v59 = vpop.f32.mrf.mxu1  ;;  %v1547_v60 = vpop.f32.mrf.mxu0 }
 0x5aa   :  { %v1478_v61 = vadd.f32 %v4031_v33, %v1477_v59  ;;  %v1548_v7 = vadd.f32 %v4070_v54, %v1547_v60  ;;  %v4370_v60 = vld [vmem:[%s4566_s1 + $0x28] sm:$0xff] }
 0x5ab   :  { %v3265_v1 = vpop.f32.mrf.mxu1  ;;  %v3276_v2 = vpop.f32.mrf.mxu0 }
 0x5ac   :  { %v1622_v3 = vadd.f32 %v1621_v63, %v1478_v61  ;;  %v1630_v13 = vadd.f32 %v1629_v9, %v1548_v7 }
 0x5ae   :  { %v2905_v4 = vmul.f32 -1.442695, %v1622_v3  ;;  %v2906_v17 = vmul.f32 -1.442695, %v1630_v13  ;;  %v1892_v3 = vsub.f32 1.0, %v4370_v60  ;;  %v4384_v13 = vld [vmem:[#allocation15 + $0x18] sm:$0xff] }
 0x5b0   :  { %3483 = vpow2.f32 %v2905_v4 }
 0x5b1   :  { %v1617_v11 = vpop.f32.mrf.mxu1  ;;  %3485 = vpow2.f32 %v2906_v17  ;;  %v4393_v17 = vld [vmem:[#allocation15 + $0x10] sm:$0xff] }
 0x5b2   :  { %v1618_v30 = vadd.f32 %v4065_v48, %v1617_v11 }
 0x5b3   :  { %v3287_v15 = vpop.f32.mrf.mxu1 }
 0x5b4   :  { %v3558_v15 = vld [vmem:[%s4570_s5 + $0x18] sm:$0xff] }
 0x5bd   :  { %v3484_v24 = vpop.eup %3483 }
 0x5be   :  { %v1626_v12 = vadd.f32 1.0, %v3484_v24  ;;  %v3486_v28 = vpop.eup %3485  ;;  %v3560_v24 = vld [vmem:[%s4570_s5 + $0x10] sm:$0xff] }
 0x5bf   :  { %v1634_v29 = vadd.f32 1.0, %v3486_v28  ;;  %v3562_v28 = vld [vmem:[%s4570_s5 + $0x8] sm:$0xff] }
 0x5c0   :  { %3487 = vrcp.f32 %v1626_v12  ;;  %v4401_v12 = vld [vmem:[#allocation15 + $0x8] sm:$0xff] }
 0x5c1   :  { %3489 = vrcp.f32 %v1634_v29  ;;  %v4409_v29 = vld [vmem:[#allocation15] sm:$0xff] }
 0x5cd   :  { %v3488_v31 = vpop.eup %3487 }
 0x5ce   :  { %v1638_v32 = vmul.f32 %v3488_v31, %v1618_v30  ;;  %v3490_v36 = vpop.eup %3489  ;;  %v3564_v30 = vld [vmem:[#allocation13 + $0x18] sm:$0xff] }
 0x5cf   :  { %v1641_v25 = vsub.f32 1.0, %v3490_v36  ;;  %v1643_v26 = vmul.f32 %v3490_v36, %v4274_v58  ;;  %v3565_v31 = vld [vmem:[%s4570_s5] sm:$0xff] }
 0x5d0   :  { %v1639_v35 = vadd.f32 %v1638_v32, %v1637_v34  ;;  %v3566_v32 = vld [vmem:[#allocation13 + $0x10] sm:$0xff]  ;;  %v3567_v34 = vld [vmem:[#allocation13 + $0x8] sm:$0xff] }
 0x5d2   :  { %3491 = vtanh.f32 %v1639_v35  ;;  %v3568_v35 = vld [vmem:[#allocation13] sm:$0xff] }
 0x5df   :  { %v3492_v38 = vpop.eup %3491 }
 0x5e0   :  { %v1642_v39 = vmul.f32 %v3492_v38, %v1641_v25 }
 0x5e2   :  { %v1644_v41 = vadd.f32 %v1643_v26, %v1642_v39  ;;  %v2109_v39 = vld [vmem:[#allocation2 + $0x30] sm:$0xff] }
 0x5e4   :  { %v1645_v42 = vmul.f32 %v1644_v41, %v4318_v37 }
 0x5e6   :  { %1646 = vst.msk [vmem:[#allocation5 + $0x20] sm:$0xff] %vm316_vm2, %v1645_v42  ;;  %1647 = vst.msk [vmem:[#allocation6 + $0x18] sm:$0xff] %vm316_vm2, %v1645_v42  ;;  %v4326_v44 = vadd.f32 %v1649_v43, %v1645_v42 }
 0x5e8   :  { %3297 = vmatmul.mubr.msk.f32.vlgmr.msra.gmra.mxu0 %vm316_vm2, %v4326_v44  ;;  %3308 = vmatmul.mubr.msk.f32.vlgmr.msra.gmra.mxu1 %vm316_vm2, %v4326_v44  ;;  %v1893_v9 = vmul.f32 %v1892_v3, %v4326_v44  ;;  %v2383_v3 = vld [vmem:[#allocation5 + $0x18] sm:$0xff] }
 0x5e9   :  { %3311 = vmatpush3.msra.mxu0 %v3980_v20  ;;  %3318 = vmatprep.mubr.msk.f32.mxu0 %vm3796_vm0, %v3795_v0 }
 0x5ea   :  { %3312 = vmatprep.subr.mxu0 %v3795_v0  ;;  %3322 = vmatpush3.msra.mxu1 %v3931_v5 }
 0x5eb   :  { %3313 = vmatpush3.msra.mxu0 %v3987_v21  ;;  %3323 = vmatprep.subr.mxu1 %v3795_v0 }
 0x5ec   :  { %3314 = vmatprep.subr.mxu0 %v3795_v0  ;;  %3324 = vmatpush3.msra.mxu1 %v3936_v6 }
 0x5ed   :  { %3315 = vmatpush3.msra.mxu0 %v3993_v22  ;;  %3325 = vmatprep.subr.mxu1 %v3795_v0 }
 0x5ee   :  { %3316 = vmatprep.subr.mxu0 %v3795_v0  ;;  %3326 = vmatpush3.msra.mxu1 %v3943_v8 }
 0x5ef   :  { %3317 = vmatpush3.msra.mxu0 %v3999_v23  ;;  %3327 = vmatprep.subr.mxu1 %v3795_v0  ;;  %v1873_v23 = vld [vmem:[#allocation3 + $0x28] sm:$0xff] }
 0x5f0   :  { %3319 = vmatmul.mubr.msk.f32.vlgmr.msra.gmra.mxu0 %vm316_vm2, %v4326_v44  ;;  %3332 = vmatprep.subr.mxu0 %v3795_v0 }
 0x5f1   :  { %3333 = vmatpush3.msra.mxu0 %v3957_v14  ;;  %3328 = vmatpush3.msra.mxu1 %v3950_v10  ;;  %v1865_v10 = vld [vmem:[#allocation2 + $0x28] sm:$0xff] }
 0x5f2   :  { %3334 = vmatprep.subr.mxu0 %v3795_v0  ;;  %3329 = vmatprep.mubr.msk.f32.mxu1 %vm3796_vm0, %v3795_v0 }
 0x5f3   :  { %3335 = vmatpush3.msra.mxu0 %v3962_v16  ;;  %3340 = vmatprep.mubr.msk.f32.mxu0 %vm3796_vm0, %v3795_v0 }
 0x5f4   :  { %3336 = vmatprep.subr.mxu0 %v3795_v0  ;;  %3343 = vmatprep.subr.mxu1 %v3795_v0 }
 0x5f5   :  { %3337 = vmatpush3.msra.mxu0 %v3969_v18 }
 0x5f6   :  { %3338 = vmatprep.subr.mxu0 %v3795_v0 }
 0x5f7   :  { %3339 = vmatpush3.msra.mxu0 %v3973_v19 }
 0x5f8   :  { %3354 = vmatprep.subr.mxu0 %v3795_v0 }
 0x6a8   :  { %v1721_v5 = vpop.f32.mrf.mxu0  ;;  %v1791_v6 = vpop.f32.mrf.mxu1 }
 0x6a9   :  { %v1722_v8 = vadd.f32 %v4031_v33, %v1721_v5  ;;  %v1792_v22 = vadd.f32 %v4070_v54, %v1791_v6 }
 0x6aa   :  { %v3298_v14 = vpop.f32.mrf.mxu0  ;;  %v3309_v16 = vpop.f32.mrf.mxu1 }
 0x6ab   :  { %v1866_v20 = vadd.f32 %v1865_v10, %v1722_v8  ;;  %v1874_v45 = vadd.f32 %v1873_v23, %v1792_v22 }
 0x6ad   :  { %v2910_v21 = vmul.f32 -1.442695, %v1866_v20  ;;  %v2911_v49 = vmul.f32 -1.442695, %v1874_v45 }
 0x6af   :  { %3493 = vpow2.f32 %v2910_v21 }
 0x6b0   :  { %v1861_v18 = vpop.f32.mrf.mxu0  ;;  %3495 = vpow2.f32 %v2911_v49 }
 0x6b1   :  { %v1862_v53 = vadd.f32 %v4065_v48, %v1861_v18  ;;  %v2125_v18 = vld [vmem:[#allocation4 + $0x30] sm:$0xff] }
 0x6b2   :  { %v3320_v46 = vpop.f32.mrf.mxu0 }
 0x6b3   :  { %v4433_v46 = vld [vmem:[%s4566_s1 + $0x30] sm:$0xff] }
 0x6bc   :  { %v3494_v19 = vpop.eup %3493 }
 0x6bd   :  { %v1870_v50 = vadd.f32 1.0, %v3494_v19  ;;  %v3496_v51 = vpop.eup %3495 }
 0x6be   :  { %v1878_v52 = vadd.f32 1.0, %v3496_v51 }
 0x6bf   :  { %3497 = vrcp.f32 %v1870_v50 }
 0x6c0   :  { %3499 = vrcp.f32 %v1878_v52  ;;  %v2136_v52 = vsub.f32 1.0, %v4433_v46 }
 0x6cc   :  { %v3498_v55 = vpop.eup %3497 }
 0x6cd   :  { %v1882_v56 = vmul.f32 %v3498_v55, %v1862_v53  ;;  %v3500_v59 = vpop.eup %3499 }
 0x6ce   :  { %v1885_v61 = vsub.f32 1.0, %v3500_v59  ;;  %v1887_v2 = vmul.f32 %v3500_v59, %v4326_v44  ;;  %v2117_v44 = vld [vmem:[#allocation3 + $0x30] sm:$0xff]  ;;  %v4465_v59 = vld [vmem:[%s4576_s11] sm:$0xff] }
 0x6cf   :  { %v1883_v58 = vadd.f32 %v1882_v56, %v1881_v57 }
 0x6d1   :  { %3501 = vtanh.f32 %v1883_v58  ;;  %v4457_v58 = vld [vmem:[%s4576_s11 + $0x8] sm:$0xff] }
 0x6de   :  { %v3502_v63 = vpop.eup %3501 }
 0x6df   :  { %v1886_v1 = vmul.f32 %v3502_v63, %v1885_v61  ;;  %v2380_v61 = vld [vmem:[#allocation5] sm:$0xff]  ;;  %v2381_v63 = vld [vmem:[#allocation5 + $0x8] sm:$0xff] }
 0x6e1   :  { %v1888_v4 = vadd.f32 %v1887_v2, %v1886_v1  ;;  %v2382_v1 = vld [vmem:[#allocation5 + $0x10] sm:$0xff]  ;;  %v2393_v2 = vld [vmem:[#allocation6 + $0x28] sm:$0xff] }
 0x6e3   :  { %v1889_v7 = vmul.f32 %v1888_v4, %v4370_v60  ;;  %v2384_v4 = vld [vmem:[#allocation5 + $0x20] sm:$0xff] }
 0x6e5   :  { %1890 = vst.msk [vmem:[#allocation5 + $0x28] sm:$0xff] %vm316_vm2, %v1889_v7  ;;  %1891 = vst.msk [vmem:[#allocation6 + $0x10] sm:$0xff] %vm316_vm2, %v1889_v7  ;;  %v4378_v11 = vadd.f32 %v1893_v9, %v1889_v7  ;;  %v2395_v7 = vld [vmem:[#allocation6 + $0x38] sm:$0xff] }
 0x6e7   :  { %3330 = vmatmul.mubr.msk.f32.vlgmr.msra.gmra.mxu1 %vm316_vm2, %v4378_v11  ;;  %3341 = vmatmul.mubr.msk.f32.vlgmr.msra.gmra.mxu0 %vm316_vm2, %v4378_v11  ;;  %v2137_v55 = vmul.f32 %v2136_v52, %v4378_v11  ;;  %v2698_v52 = vld [vmem:[%s4566_s1] sm:$0xff] }
 0x6e8   :  { %3344 = vmatpush3.msra.mxu1 %v4384_v13  ;;  %3351 = vmatprep.mubr.msk.f32.mxu1 %vm3796_vm0, %v3795_v0 }
 0x6e9   :  { %3345 = vmatprep.subr.mxu1 %v3795_v0  ;;  %3355 = vmatpush3.msra.mxu0 %v3558_v15 }
 0x6ea   :  { %3346 = vmatpush3.msra.mxu1 %v4393_v17  ;;  %3356 = vmatprep.subr.mxu0 %v3795_v0 }
 0x6eb   :  { %3347 = vmatprep.subr.mxu1 %v3795_v0  ;;  %3357 = vmatpush3.msra.mxu0 %v3560_v24  ;;  %v3569_v24 = vld [vmem:[#allocation16] ss:$0 sm:$0xff] }
 0x6ec   :  { %3348 = vmatpush3.msra.mxu1 %v4401_v12  ;;  %3358 = vmatprep.subr.mxu0 %v3795_v0  ;;  %v2385_v9 = vld [vmem:[#allocation5 + $0x28] sm:$0xff] }
 0x6ed   :  { %3349 = vmatprep.subr.mxu1 %v3795_v0  ;;  %3359 = vmatpush3.msra.mxu0 %v3562_v28  ;;  %v2353_v28 = vld [vmem:[#allocation2 + $0x38] sm:$0xff] }
 0x6ee   :  { %3350 = vmatpush3.msra.mxu1 %v4409_v29  ;;  %3360 = vmatprep.subr.mxu0 %v3795_v0 }
 0x6ef   :  { %3352 = vmatmul.mubr.msk.f32.vlgmr.msra.gmra.mxu1 %vm316_vm2, %v4378_v11  ;;  %3365 = vmatprep.subr.mxu1 %v3795_v0 }
 0x6f0   :  { %3366 = vmatpush3.msra.mxu1 %v3564_v30  ;;  %3361 = vmatpush3.msra.mxu0 %v3565_v31 }
 0x6f1   :  { %3367 = vmatprep.subr.mxu1 %v3795_v0  ;;  %3362 = vmatprep.mubr.msk.f32.mxu0 %vm3796_vm0, %v3795_v0 }
 0x6f2   :  { %3368 = vmatpush3.msra.mxu1 %v3566_v32  ;;  %3373 = vmatprep.mubr.msk.f32.mxu1 %vm3796_vm0, %v3795_v0 }
 0x6f3   :  { %3369 = vmatprep.subr.mxu1 %v3795_v0  ;;  %3376 = vmatprep.subr.mxu0 %v3795_v0 }
 0x6f4   :  { %3370 = vmatpush3.msra.mxu1 %v3567_v34  ;;  %v3570_v34 = vld [vmem:[#allocation18] ss:$0 sm:$0xff] }
 0x6f5   :  { %3371 = vmatprep.subr.mxu1 %v3795_v0 }
 0x6f6   :  { %3372 = vmatpush3.msra.mxu1 %v3568_v35 }
 0x7a7   :  { %v1965_v36 = vpop.f32.mrf.mxu1  ;;  %v2035_v25 = vpop.f32.mrf.mxu0 }
 0x7a8   :  { %v1966_v38 = vadd.f32 %v4031_v33, %v1965_v36  ;;  %v2036_v43 = vadd.f32 %v4070_v54, %v2035_v25  ;;  %v2361_v36 = vld [vmem:[#allocation3 + $0x38] sm:$0xff] }
 0x7a9   :  { %v3331_v26 = vpop.f32.mrf.mxu1  ;;  %v3342_v40 = vpop.f32.mrf.mxu0 }
 0x7aa   :  { %v2110_v41 = vadd.f32 %v2109_v39, %v1966_v38  ;;  %v2118_v6 = vadd.f32 %v2117_v44, %v2036_v43  ;;  %v3571_v44 = vld [vmem:[%s4575_s10] ss:$0 sm:$0xff] }
 0x7ac   :  { %v2915_v42 = vmul.f32 -1.442695, %v2110_v41  ;;  %v2916_v10 = vmul.f32 -1.442695, %v2118_v6 }
 0x7ae   :  { %3503 = vpow2.f32 %v2915_v42 }
 0x7af   :  { %v2105_v5 = vpop.f32.mrf.mxu1  ;;  %3505 = vpow2.f32 %v2916_v10  ;;  %v2369_v10 = vld [vmem:[#allocation4 + $0x38] sm:$0xff] }
 0x7b0   :  { %v2106_v33 = vadd.f32 %v4065_v48, %v2105_v5 }
 0x7b1   :  { %v3353_v8 = vpop.f32.mrf.mxu1 }
 0x7bb   :  { %v3504_v14 = vpop.eup %3503 }
 0x7bc   :  { %v2114_v16 = vadd.f32 1.0, %v3504_v14  ;;  %v3506_v20 = vpop.eup %3505 }
 0x7bd   :  { %v2122_v21 = vadd.f32 1.0, %v3506_v20 }
 0x7be   :  { %3507 = vrcp.f32 %v2114_v16 }
 0x7bf   :  { %3509 = vrcp.f32 %v2122_v21 }
 0x7cb   :  { %v3508_v22 = vpop.eup %3507 }
 0x7cc   :  { %v2126_v23 = vmul.f32 %v3508_v22, %v2106_v33  ;;  %v3510_v54 = vpop.eup %3509 }
 0x7cd   :  { %v2129_v49 = vsub.f32 1.0, %v3510_v54  ;;  %v2131_v51 = vmul.f32 %v3510_v54, %v4378_v11  ;;  %v2399_v11 = vld [vmem:[#allocation19 + $0x8] sm:$0xff] }
 0x7ce   :  { %v2127_v45 = vadd.f32 %v2126_v23, %v2125_v18  ;;  %3387 = vmatprep.subr.mxu1 %v2399_v11  ;;  %v2139_v23 = vld [vmem:[%s4566_s1 + $0x38] sm:$0xff] }
 0x7d0   :  { %3511 = vtanh.f32 %v2127_v45 }
 0x7dd   :  { %v3512_v19 = vpop.eup %3511 }
 0x7de   :  { %v2130_v50 = vmul.f32 %v3512_v19, %v2129_v49  ;;  %v2390_v49 = vld [vmem:[#allocation6 + $0x10] sm:$0xff]  ;;  %v3800_v19 = vmov 0  }
 0x7df   :  { %3442 = vset.pattern.permute.xlu1 %v3800_v19  ;;  %3441 = vset.pattern.permute.xlu0 %v3800_v19 }
 0x7e0   :  { %v2132_v48 = vadd.f32 %v2131_v51, %v2130_v50  ;;  %v2392_v50 = vld [vmem:[#allocation6 + $0x20] sm:$0xff]  ;;  %v2394_v51 = vld [vmem:[#allocation6 + $0x30] sm:$0xff] }
 0x7e2   :  { %v2133_v53 = vmul.f32 %v2132_v48, %v4433_v46 }
 0x7e4   :  { %2134 = vst.msk [vmem:[#allocation5 + $0x30] sm:$0xff] %vm316_vm2, %v2133_v53  ;;  %2135 = vst.msk [vmem:[#allocation6 + $0x8] sm:$0xff] %vm316_vm2, %v2133_v53  ;;  %v4441_v56 = vadd.f32 %v2137_v55, %v2133_v53 }
 0x7e6   :  { %3363 = vmatmul.mubr.msk.f32.vlgmr.msra.gmra.mxu0 %vm316_vm2, %v4441_v56  ;;  %3374 = vmatmul.mubr.msk.f32.vlgmr.msra.gmra.mxu1 %vm316_vm2, %v4441_v56 }
 0x7e7   :  { %3377 = vmatpush3.msra.mxu0 %v4384_v13  ;;  %3384 = vmatprep.mubr.msk.f32.mxu0 %vm3796_vm0, %v3795_v0  ;;  %v2398_v13 = vld [vmem:[#allocation19] sm:$0xff] }
 0x7e8   :  { %3378 = vmatprep.subr.mxu0 %v3795_v0  ;;  %3388 = vmatpush3.msra.mxu1 %v2399_v11 }
 0x7e9   :  { %3379 = vmatpush3.msra.mxu0 %v4393_v17  ;;  %3389 = vmatprep.subr.mxu1 %v2398_v13 }
 0x7ea   :  { %3380 = vmatprep.subr.mxu0 %v3795_v0  ;;  %3390 = vmatpush3.msra.mxu1 %v2398_v13 }
 0x7eb   :  { %3381 = vmatpush3.msra.mxu0 %v4401_v12  ;;  %v2389_v57 = vld [vmem:[#allocation6 + $0x8] sm:$0xff]  ;;  %3419 = vmatprep.subr.mxu1 %v4457_v58  ;;  %v2386_v55 = vld [vmem:[#allocation5 + $0x30] sm:$0xff] }
 0x7ec   :  { %3382 = vmatprep.subr.mxu0 %v3795_v0  ;;  %2410 = vrot.lane.b32.xlu1 %v2389_v57, %s3799_s16  ;;  %v2391_v0 = vld [vmem:[#allocation6 + $0x18] sm:$0xff] }
 0x7ed   :  { %3383 = vmatpush3.msra.mxu0 %v4409_v29 }
 0x7ee   :  { %3385 = vmatmul.mubr.msk.f32.vlgmr.msra.gmra.mxu0 %vm316_vm2, %v4441_v56  ;;  %3403 = vmatprep.subr.mxu0 %v4457_v58 }
 0x7ef   :  { %3404 = vmatpush3.msra.mxu0 %v4457_v58  ;;  %3407 = vmatprep.mubr.msk.f32.mxu0 %vm2424_vm3, %v2380_v61 }
 0x7f0   :  { %3405 = vmatprep.subr.mxu0 %v4465_v59  ;;  %2414 = vrot.lane.b32.xlu1 %v2391_v0, %s3799_s16  ;;  %v2938_v0 = vld [vmem:[#allocation21] ss:$0 sm:$0xff] }
 0x7f1   :  { %3406 = vmatpush3.msra.mxu0 %v4465_v59 }
 0x7f2   :  { %3408 = vmatmul.mubr.msk.f32.vlgmr.msra.gmra.mxu0 %vm2424_vm3, %v2381_v63 }
 0x7f3   :  { %3410 = vmatprep.mubr.msk.f32.mxu0 %vm2424_vm3, %v2382_v1 }
 0x7f4   :  { %2418 = vrot.lane.b32.xlu1 %v2393_v2, %s3799_s16 }
 0x7f6   :  { %3411 = vmatmul.mubr.msk.f32.gmra.mxu0 %vm2424_vm3, %v2383_v3 }
 0x7f7   :  { %3413 = vmatprep.mubr.msk.f32.mxu0 %vm2424_vm3, %v2384_v4 }
 0x7f8   :  { %2422 = vrot.lane.b32.xlu1 %v2395_v7, %s3799_s16 }
 0x7fa   :  { %3414 = vmatmul.mubr.msk.f32.gmra.mxu0 %vm2424_vm3, %v2385_v9 }
 0x7fc   :  { %2713 = vperm.xlu1 %3442, %v4162_v27  }
 0x800   :  { %2718 = vperm.xlu1 %3442, %v4214_v62  }
 0x804   :  { %2728 = vperm.xlu1 %3442, %v4318_v37  }
 0x808   :  { %2738 = vperm.xlu1 %3442, %v4433_v46  }
 0x85e   :  { %v2411_v27 = vpop.permute.xlu1 %2410 }
 0x862   :  { %v2415_v62 = vpop.permute.xlu1 %2414 }
 0x8a6   :  { %v2209_v15 = vpop.f32.mrf.mxu0  ;;  %v2279_v17 = vpop.f32.mrf.mxu1 }
 0x8a7   :  { %v2210_v12 = vadd.f32 %v3569_v24, %v2209_v15  ;;  %v2280_v35 = vadd.f32 %v3570_v34, %v2279_v17 }
 0x8a8   :  { %v3364_v29 = vpop.f32.mrf.mxu0  ;;  %v3375_v30 = vpop.f32.mrf.mxu1 }
 0x8a9   :  { %v2354_v31 = vadd.f32 %v2353_v28, %v2210_v12  ;;  %v2362_v38 = vadd.f32 %v2361_v36, %v2280_v35 }
 0x8ab   :  { %v2920_v32 = vmul.f32 -1.442695, %v2354_v31  ;;  %v2921_v26 = vmul.f32 -1.442695, %v2362_v38 }
 0x8ad   :  { %3513 = vpow2.f32 %v2920_v32 }
 0x8ae   :  { %v2349_v25 = vpop.f32.mrf.mxu0  ;;  %3515 = vpow2.f32 %v2921_v26 }
 0x8af   :  { %v2350_v5 = vadd.f32 %v3571_v44, %v2349_v25 }
 0x8b0   :  { %v3386_v39 = vpop.f32.mrf.mxu0 }
 0x8b2   :  { %v3409_v57 = vpop.f32.mrf.mxu0 }
 0x8ba   :  { %v3514_v40 = vpop.eup %3513 }
 0x8bb   :  { %v2358_v41 = vadd.f32 1.0, %v3514_v40  ;;  %v3516_v42 = vpop.eup %3515 }
 0x8bc   :  { %v2366_v43 = vadd.f32 1.0, %v3516_v42 }
 0x8bd   :  { %3517 = vrcp.f32 %v2358_v41 }
 0x8be   :  { %3519 = vrcp.f32 %v2366_v43  ;;  %v2754_v43 = vld [vmem:[%s4579_s14] sm:$0xff]  ;;  %s3801_s14 = smov [#allocation22]  }
 0x8bf   :  { %s2857_s23 = sshll.u32 %s3801_s14, 4  ;;  %s2858_s23 = int_to_ptr.vmem [resolvable:$true] %s2857_s23 }
 0x8c0   :  { %s3752_s2 = scalar_lea.vmem %s2858_s23, 128  ;;  %p3757_p4 = scmp.lt.s32.totalorder %s2858_s23, %s2858_s23 }
 0x8c1   :  { %p3753_p3 = scmp.ne.s32.totalorder %s2858_s23, %s3752_s2  ;;  %p3758_p5 = scmp.lt.s32.totalorder %s3752_s2, %s3752_s2 }
 0x8c3   :  { %p3759_p6 = por %p3758_p5, %p3757_p4 }
 0x8c5   :  { %p3760_p7 = pnand %p3759_p6, %p3753_p3 }
 0x8ca   :  { %v3518_v6 = vpop.eup %3517 }
 0x8cb   :  { %v2370_v8 = vmul.f32 %v3518_v6, %v2350_v5  ;;  %v3520_v16 = vpop.eup %3519 }
 0x8cc   :  { %v2373_v20 = vsub.f32 1.0, %v3520_v16  ;;  %v2375_v33 = vmul.f32 %v3520_v16, %v4441_v56 }
 0x8cd   :  { %v2371_v14 = vadd.f32 %v2370_v8, %v2369_v10 }
 0x8cf   :  { %3521 = vtanh.f32 %v2371_v14 }
 0x8dc   :  { %v3522_v21 = vpop.eup %3521 }
 0x8dd   :  { %v2374_v22 = vmul.f32 %v3522_v21, %v2373_v20 }
 0x8df   :  { %v2376_v18 = vadd.f32 %v2375_v33, %v2374_v22 }
 0x8e1   :  { %v2377_v45 = vmul.f32 %v2376_v18, %v2139_v23 }
 0x8e3   :  { %2378 = vst.msk [vmem:[#allocation5 + $0x38] sm:$0xff] %vm316_vm2, %v2377_v45  ;;  %2379 = vst.msk [vmem:[#allocation6] sm:$0xff] %vm316_vm2, %v2377_v45 }
 0x8ea   :  { %v2388_v54 = vld [vmem:[#allocation6] sm:$0xff]  ;;  %v2387_v56 = vld [vmem:[#allocation5 + $0x38] sm:$0xff] }
 0x8eb   :  { %2408 = vrot.lane.b32.xlu0 %v2388_v54, %s3799_s16 }
 0x8ef   :  { %2412 = vrot.lane.b32.xlu0 %v2390_v49, %s3799_s16 }
 0x8f3   :  { %2416 = vrot.lane.b32.xlu0 %v2392_v50, %s3799_s16 }
 0x8f7   :  { %2420 = vrot.lane.b32.xlu0 %v2394_v51, %s3799_s16 }
 0x8fb   :  { %2708 = vperm.xlu0 %3441, %v2698_v52  }
 0x8ff   :  { %2723 = vperm.xlu0 %3441, %v4266_v47   ;;  %v2419_v47 = vpop.permute.xlu1 %2418 }
 0x903   :  { %2733 = vperm.xlu0 %3441, %v4370_v60   ;;  %v2423_v46 = vpop.permute.xlu1 %2422 }
 0x907   :  { %2743 = vperm.xlu0 %3441, %v2139_v23   ;;  %v2714_v39 = vpop.permute.xlu1 %2713 }
 0x90b   :  { %v2719_v33 = vpop.permute.xlu1 %2718 }
 0x95d   :  { %v2409_v48 = vpop.permute.xlu0 %2408 }
 0x95e   :  { %3391 = vmatprep.mubr.msk.f32.mxu1 %vm2424_vm3, %v2409_v48 }
 0x95f   :  { %3392 = vmatmul.mubr.msk.f32.vlgmr.msra.gmra.mxu1 %vm2424_vm3, %v2411_v27 }
 0x960   :  { %3421 = vmatpush3.msra.mxu1 %v4457_v58  ;;  %v2636_v58 = vpop.f32.mrf.mxu0 }
 0x961   :  { %v2413_v53 = vpop.permute.xlu0 %2412  ;;  %3420 = vmatprep.subr.mxu1 %v4465_v59 }
 0x962   :  { %3394 = vmatprep.mubr.msk.f32.mxu1 %vm2424_vm3, %v2413_v53  ;;  %3422 = vmatpush3.msra.mxu1 %v4465_v59  ;;  %v3412_v59 = vpop.f32.mrf.mxu0 }
 0x963   :  { %3395 = vmatmul.mubr.msk.f32.gmra.mxu1 %vm2424_vm3, %v2415_v62  ;;  %v2729_v62 = vpop.permute.xlu1 %2728 }
 0x964   :  { %v2646_v1 = vpop.f32.mrf.mxu0 }
 0x965   :  { %v2417_v37 = vpop.permute.xlu0 %2416 }
 0x966   :  { %3397 = vmatprep.mubr.msk.f32.mxu1 %vm2424_vm3, %v2417_v37  ;;  %v3415_v13 = vpop.f32.mrf.mxu0 }
 0x967   :  { %3398 = vmatmul.mubr.msk.f32.gmra.mxu1 %vm2424_vm3, %v2419_v47 }
 0x968   :  { %v2656_v30 = vpop.f32.mrf.mxu0 }
 0x969   :  { %v2421_v60 = vpop.permute.xlu0 %2420 }
 0x96a   :  { %3400 = vmatprep.mubr.msk.f32.mxu1 %vm2424_vm3, %v2421_v60 }
 0x96b   :  { %3401 = vmatmul.mubr.msk.f32.gmra.mxu1 %vm2424_vm3, %v2423_v46 }
 0x96c   :  { %3416 = vmatprep.mubr.msk.f32.mxu1 %vm2424_vm3, %v2386_v55 }
 0x96f   :  { %3417 = vmatmul.mubr.msk.f32.vlgmr.msra.gmra.mxu1 %vm2424_vm3, %v2387_v56 }
 0x976   :  { %v2709_v25 = vpop.permute.xlu0 %2708 }
 0x97a   :  { %v2724_v10 = vpop.permute.xlu0 %2723 }
 0x97e   :  { %v2734_v51 = vpop.permute.xlu0 %2733 }
 0xa1f   :  { %v3393_v61 = vpop.f32.mrf.mxu1 }
 0xa20   :  { %v2642_v63 = vadd.f32 %v3409_v57, %v3393_v61 }
 0xa21   :  { %v2507_v2 = vpop.f32.mrf.mxu1 }
 0xa22   :  { %v2683_v3 = vadd.f32 %v2938_v0, %v2642_v63  ;;  %v2637_v4 = vadd.f32 %v2636_v58, %v2507_v2  ;;  %v2744_v58 = vpop.permute.xlu0 %2743 }
 0xa23   :  { %v3396_v7 = vpop.f32.mrf.mxu1 }
 0xa24   :  { %3523 = vtanh.f32 %v2683_v3  ;;  %v2682_v9 = vadd.f32 %v2938_v0, %v2637_v4  ;;  %v2652_v11 = vadd.f32 %v3412_v59, %v3396_v7 }
 0xa25   :  { %v2517_v15 = vpop.f32.mrf.mxu1 }
 0xa26   :  { %3525 = vtanh.f32 %v2682_v9  ;;  %v2685_v17 = vadd.f32 %v2938_v0, %v2652_v11  ;;  %v2647_v24 = vadd.f32 %v2646_v1, %v2517_v15 }
 0xa27   :  { %v3399_v12 = vpop.f32.mrf.mxu1 }
 0xa28   :  { %3527 = vtanh.f32 %v2685_v17  ;;  %v2684_v28 = vadd.f32 %v2938_v0, %v2647_v24  ;;  %v2662_v29 = vadd.f32 %v3415_v13, %v3399_v12 }
 0xa29   :  { %v2527_v31 = vpop.f32.mrf.mxu1 }
 0xa2a   :  { %3529 = vtanh.f32 %v2684_v28  ;;  %v2687_v32 = vadd.f32 %v2938_v0, %v2662_v29  ;;  %v2657_v34 = vadd.f32 %v2656_v30, %v2527_v31 }
 0xa2b   :  { %v3402_v35 = vpop.f32.mrf.mxu1 }
 0xa2c   :  { %3531 = vtanh.f32 %v2687_v32  ;;  %v2686_v36 = vadd.f32 %v2938_v0, %v2657_v34 }
 0xa2d   :  { %v2537_v38 = vpop.f32.mrf.mxu1 }
 0xa2e   :  { %3533 = vtanh.f32 %v2686_v36 }
 0xa2f   :  { %v3418_v26 = vpop.f32.mrf.mxu1 }
 0xa30   :  { %v2672_v40 = vadd.f32 %v3418_v26, %v3402_v35 }
 0xa31   :  { %v3524_v41 = vpop.eup %3523  ;;  %v2666_v42 = vpop.f32.mrf.mxu1 }
 0xa32   :  { %v4521_v44 = vmul.f32 %v3524_v41, %v2714_v39  ;;  %v2689_v5 = vadd.f32 %v2938_v0, %v2672_v40  ;;  %v2667_v6 = vadd.f32 %v2666_v42, %v2537_v38 }
 0xa33   :  { %v3526_v8 = vpop.eup %3525 }
 0xa34   :  { %v4523_v14 = vmul.f32 %v3526_v8, %v2709_v25  ;;  %3535 = vtanh.f32 %v2689_v5  ;;  %v2688_v16 = vadd.f32 %v2938_v0, %v2667_v6  ;;  %v2759_v20 = vmul.f32 %v2754_v43, %v4521_v44  ;;  %v2739_v0 = vpop.permute.xlu1 %2738 }
 0xa35   :  { %v3528_v21 = vpop.eup %3527 }
 0xa36   :  { %v4526_v22 = vmul.f32 %v3528_v21, %v2724_v10  ;;  %3537 = vtanh.f32 %v2688_v16  ;;  %v2760_v23 = vsel %vm316_vm2, %v2759_v20, 0.0  ;;  %v2755_v18 = vmul.f32 %v2754_v43, %v4523_v14 }
 0xa37   :  { %v3530_v45 = vpop.eup %3529  ;;  %2761 = vadd.xlane.f32.xlu0 %v2760_v23 }
 0xa38   :  { %v4530_v54 = vmul.f32 %v3530_v45, %v2719_v33  ;;  %v2756_v49 = vsel %vm316_vm2, %v2755_v18, 0.0  ;;  %v2767_v19 = vmul.f32 %v2754_v43, %v4526_v22 }
 0xa39   :  { %v3532_v50 = vpop.eup %3531  ;;  %2757 = vadd.xlane.f32.xlu1 %v2756_v49 }
 0xa3a   :  { %v4534_v52 = vmul.f32 %v3532_v50, %v2734_v51  ;;  %v2763_v27 = vmul.f32 %v2754_v43, %v4530_v54  ;;  %v2768_v37 = vsel %vm316_vm2, %v2767_v19, 0.0 }
 0xa3b   :  { %v3534_v48 = vpop.eup %3533 }
 0xa3c   :  { %v4537_v53 = vmul.f32 %v3534_v48, %v2729_v62  ;;  %v2764_v47 = vsel %vm316_vm2, %v2763_v27, 0.0  ;;  %v2775_v60 = vmul.f32 %v2754_v43, %v4534_v52 }
 0xa3d   :  { %2765 = vadd.xlane.f32.xlu0 %v2764_v47  ;;  %2769 = vadd.xlane.f32.xlu1 %v2768_v37 }
 0xa3e   :  { %v2771_v46 = vmul.f32 %v2754_v43, %v4537_v53  ;;  %v2776_v56 = vsel %vm316_vm2, %v2775_v60, 0.0 }
 0xa40   :  { %v2772_v55 = vsel %vm316_vm2, %v2771_v46, 0.0 }
 0xa41   :  { %v3536_v57 = vpop.eup %3535  ;;  %2773 = vadd.xlane.f32.xlu0 %v2772_v55  ;;  %2777 = vadd.xlane.f32.xlu1 %v2776_v56 }
 0xa42   :  { %v4545_v59 = vmul.f32 %v3536_v57, %v2744_v58 }
 0xa43   :  { %v3538_v61 = vpop.eup %3537 }
 0xa44   :  { %v4547_v63 = vmul.f32 %v3538_v61, %v2739_v0  ;;  %v2783_v1 = vmul.f32 %v2754_v43, %v4545_v59 }
 0xa46   :  { %v2784_v2 = vsel %vm316_vm2, %v2783_v1, 0.0  ;;  %v2779_v3 = vmul.f32 %v2754_v43, %v4547_v63 }
 0xa47   :  { %2785 = vadd.xlane.f32.xlu1 %v2784_v2 }
 0xa48   :  { %v2780_v4 = vsel %vm316_vm2, %v2779_v3, 0.0 }
 0xa49   :  { %2781 = vadd.xlane.f32.xlu0 %v2780_v4 }
 0xac0   :  { %v2762_v7 = vpop.xlane.xlu0 %2761 }
 0xac2   :  { %v2758_v9 = vpop.xlane.xlu1 %2757 }
 0xac3   :  { %v2787_v11 = vmax.f32 %v2758_v9, %v2762_v7 }
 0xac6   :  { %v2766_v13 = vpop.xlane.xlu0 %2765  ;;  %v2770_v17 = vpop.xlane.xlu1 %2769 }
 0xac7   :  { %v2788_v15 = vmax.f32 %v2787_v11, %v2766_v13 }
 0xac9   :  { %v2789_v24 = vmax.f32 %v2788_v15, %v2770_v17 }
 0xaca   :  { %v2774_v12 = vpop.xlane.xlu0 %2773  ;;  %v2778_v29 = vpop.xlane.xlu1 %2777 }
 0xacb   :  { %v2790_v28 = vmax.f32 %v2789_v24, %v2774_v12 }
 0xacd   :  { %v2791_v30 = vmax.f32 %v2790_v28, %v2778_v29 }
 0xad0   :  { %v2786_v34 = vpop.xlane.xlu1 %2785 }
 0xad2   :  { %v2782_v31 = vpop.xlane.xlu0 %2781 }
 0xad3   :  { %v2792_v32 = vmax.f32 %v2791_v30, %v2782_v31 }
 0xad5   :  { %v2793_v35 = vmax.f32 %v2792_v32, %v2786_v34 }
 0xad7   :  { %v2794_v36 = vsub.f32 %v2758_v9, %v2793_v35  ;;  %v2797_v25 = vsub.f32 %v2762_v7, %v2793_v35  ;;  %v2800_v38 = vsub.f32 %v2766_v13, %v2793_v35  ;;  %v2803_v39 = vsub.f32 %v2770_v17, %v2793_v35 }
 0xad8   :  { %v2806_v42 = vsub.f32 %v2774_v12, %v2793_v35  ;;  %v2809_v5 = vsub.f32 %v2778_v29, %v2793_v35  ;;  %v2812_v8 = vsub.f32 %v2782_v31, %v2793_v35  ;;  %v2815_v16 = vsub.f32 %v2786_v34, %v2793_v35 }
 0xad9   :  { %v2795_v26 = vmul.f32 1.442695, %v2794_v36  ;;  %v2798_v40 = vmul.f32 1.442695, %v2797_v25  ;;  %v2801_v41 = vmul.f32 1.442695, %v2800_v38 }
 0xada   :  { %v2804_v43 = vmul.f32 1.442695, %v2803_v39  ;;  %v2807_v6 = vmul.f32 1.442695, %v2806_v42  ;;  %v2810_v10 = vmul.f32 1.442695, %v2809_v5 }
 0xadb   :  { %3539 = vpow2.f32 %v2795_v26  ;;  %v2813_v20 = vmul.f32 1.442695, %v2812_v8  ;;  %v2816_v21 = vmul.f32 1.442695, %v2815_v16 }
 0xadc   :  { %3541 = vpow2.f32 %v2798_v40 }
 0xadd   :  { %3543 = vpow2.f32 %v2801_v41 }
 0xade   :  { %3545 = vpow2.f32 %v2804_v43 }
 0xadf   :  { %3547 = vpow2.f32 %v2807_v6 }
 0xae0   :  { %3549 = vpow2.f32 %v2810_v10 }
 0xae1   :  { %3551 = vpow2.f32 %v2813_v20 }
 0xae2   :  { %3553 = vpow2.f32 %v2816_v21 }
 0xae8   :  { %v3540_v33 = vpop.eup %3539 }
 0xae9   :  { %v3542_v23 = vpop.eup %3541 }
 0xaea   :  { %v2818_v18 = vadd.f32 %v3542_v23, %v3540_v33  ;;  %v3544_v45 = vpop.eup %3543 }
 0xaeb   :  { %v3546_v19 = vpop.eup %3545 }
 0xaec   :  { %v2819_v49 = vadd.f32 %v3544_v45, %v2818_v18  ;;  %v3548_v51 = vpop.eup %3547 }
 0xaed   :  { %v3550_v48 = vpop.eup %3549 }
 0xaee   :  { %v2820_v50 = vadd.f32 %v3546_v19, %v2819_v49  ;;  %v3552_v47 = vpop.eup %3551 }
 0xaef   :  { %v3554_v60 = vpop.eup %3553 }
 0xaf0   :  { %v2821_v27 = vadd.f32 %v3548_v51, %v2820_v50 }
 0xaf2   :  { %v2822_v62 = vadd.f32 %v3550_v48, %v2821_v27 }
 0xaf4   :  { %v2823_v37 = vadd.f32 %v3552_v47, %v2822_v62 }
 0xaf6   :  { %v2824_v46 = vadd.f32 %v3554_v60, %v2823_v37 }
 0xaf8   :  { %3555 = vrcp.f32 %v2824_v46 }
 0xb05   :  { %v3556_v55 = vpop.eup %3555 }
 0xb06   :  { %v2826_v56 = vmul.f32 %v3556_v55, %v3540_v33  ;;  %v2829_v57 = vmul.f32 %v3556_v55, %v3542_v23  ;;  %v2832_v58 = vmul.f32 %v3556_v55, %v3544_v45  ;;  %v2835_v1 = vmul.f32 %v3556_v55, %v3546_v19 }
 0xb07   :  { %v2838_v4 = vmul.f32 %v3556_v55, %v3548_v51  ;;  %v2841_v11 = vmul.f32 %v3556_v55, %v3550_v48  ;;  %v2844_v17 = vmul.f32 %v3556_v55, %v3552_v47  ;;  %v2847_v28 = vmul.f32 %v3556_v55, %v3554_v60 }
 0xb08   :  { %v2827_v61 = vmul.f32 %v2826_v56, %v4523_v14  ;;  %v2830_v0 = vmul.f32 %v2829_v57, %v4521_v44  ;;  %v2833_v3 = vmul.f32 %v2832_v58, %v4530_v54  ;;  %v2836_v9 = vmul.f32 %v2835_v1, %v4526_v22 }
 0xb09   :  { %v2839_v15 = vmul.f32 %v2838_v4, %v4537_v53  ;;  %v2842_v12 = vmul.f32 %v2841_v11, %v4534_v52  ;;  %v2845_v44 = vmul.f32 %v2844_v17, %v4547_v63  ;;  %v2848_v54 = vmul.f32 %v2847_v28, %v4545_v59 }
 0xb0a   :  { %v2831_v2 = vadd.f32 %v2830_v0, %v2827_v61 }
 0xb0c   :  { %v2834_v7 = vadd.f32 %v2833_v3, %v2831_v2 }
 0xb0e   :  { %v2837_v13 = vadd.f32 %v2836_v9, %v2834_v7 }
 0xb10   :  { %v2840_v24 = vadd.f32 %v2839_v15, %v2837_v13 }
 0xb12   :  { %v2843_v14 = vadd.f32 %v2842_v12, %v2840_v24 }
 0xb14   :  { %v2846_v29 = vadd.f32 %v2845_v44, %v2843_v14 }
 0xb16   :  { %v2849_v30 = vadd.f32 %v2848_v54, %v2846_v29 }
 0xb18   :  { %2850 = vst.msk [vmem:[#allocation22] sm:$0xff] %vm316_vm2, %v2849_v30 }
 0xb19   :  { %3763 = shalt.err (!%p3760_p7)
}
 0xb1a   :  { %2860 = dma.vmem_to_hbm [thread:$0]  %s2858_s23, 128, %s4580_s15, [#allocation9]  }
 0xb1b   :  { %3782 = dma.done.wait [#allocation9], 128  }
 0xb1c   :  { %3783 = vsyncadd [#allocation9], 4294967168 }
 0xb1d   :  { %2864 = vsyncpa [#allocation8], 1 }
 0xb1e   :  { %2865 = vsyncpa [#allocation11], 1 }
 0xb1f   :  { %2866 = vsyncpa [#allocation14], 1 }
 0xb20   :  { %2867 = vsyncpa [#allocation17], 1 }
 0xb21   :  { %2868 = vsyncpa [#allocation20], 1 }
 0xb22   :  { %2869 = vsyncpa [#allocation9], 1 }

</bundles_post_ra>
